<compile_context>
chip_gen: v5e
topology: v5e:2x2
jax: 0.10.0
libtpu: 0.0.40
codegen_flags: <defaults>
</compile_context>

<pallas_src>
import functools

import jax
import jax.numpy as jnp
from jax.experimental import pallas as pl
from jax.experimental.pallas import tpu as pltpu


def _inception_conv_kernel(x_ref, w_ref, b_ref, o_ref, *, kh, kw, stride, Ho, Wo):
    """One batch image per grid step.

    x_ref: (1, Cin, Hp, Wp)        padded NCHW input tile
    w_ref: (Cout, kh*kw*Cin)       prepacked fused weight slab
    b_ref: (Cout, 1)               fused bias (column vector)
    o_ref: (1, Cout, Ho*Wo)        output tile (lane-dense last dim)
    """
    cin = x_ref.shape[1]
    x = x_ref[0]  # (Cin, Hp, Wp)

    # Build the per-image im2col slab with Ho*Wo on the lane axis.
    # Tap order (di, dj) matches the column order of the prepacked weights.
    # NOTE: stride is 1 for this config, so the slices are plain windows;
    # for stride > 1 pre-stride in the wrapper to avoid per-tap relayouts.
    rows = []
    for di in range(kh):
        for dj in range(kw):
            patch = jax.lax.slice(
                x,
                (0, di, dj),
                (cin, di + (Ho - 1) * stride + 1, dj + (Wo - 1) * stride + 1),
                (1, stride, stride),
            )  # (Cin, Ho, Wo)
            rows.append(patch.reshape(cin, Ho * Wo))
    im2col = jnp.concatenate(rows, axis=0)  # (kh*kw*Cin, Ho*Wo)

    # Single fused MXU matmul, f32 accumulation; bias broadcast on VPU.
    acc = jnp.dot(w_ref[...], im2col, preferred_element_type=jnp.float32)
    acc = acc + b_ref[...].astype(jnp.float32)            # (Cout, 1) broadcast
    o_ref[0] = acc.astype(o_ref.dtype)                     # lane-dense store


def prepack_inception_params(weights, biases):
    """One-time fusion of the 4 convs (hoisted out of the per-call path).

    weights: list of 4 arrays (Cout_i, Cin, kh, kw)
    biases : list of 4 arrays (Cout_i,)
    Returns (w_slab (Cout, kh*kw*Cin), b_col (Cout, 1), kh, kw).
    Output-channel order is [conv1, conv2, conv3, conv4] == torch.cat(dim=1).
    """
    w = jnp.concatenate(weights, axis=0)   # (Cout, Cin, kh, kw)
    b = jnp.concatenate(biases, axis=0)    # (Cout,)
    cout, cin, kh, kw = w.shape
    # Column order (di, dj, c) must match the in-kernel im2col row order.
    w_slab = jnp.transpose(w, (0, 2, 3, 1)).reshape(cout, kh * kw * cin)
    return w_slab, b.reshape(cout, 1), kh, kw


@functools.partial(jax.jit, static_argnames=("kh", "kw", "stride", "padding"))
def inception_forward(x_nchw, w_slab, b_col, *, kh, kw, stride, padding):
    """x_nchw: (N, Cin, H, W);  w_slab: (Cout, kh*kw*Cin);  b_col: (Cout, 1)."""
    n, cin, h, wdt = x_nchw.shape
    cout = w_slab.shape[0]
    assert w_slab.shape[1] == kh * kw * cin

    ho = (h + 2 * padding - kh) // stride + 1
    wo = (wdt + 2 * padding - kw) // stride + 1

    # Only spatial zero-padding remains outside the kernel (no transposes).
    x_pad = jnp.pad(
        x_nchw, ((0, 0), (0, 0), (padding, padding), (padding, padding))
    )
    hp, wp = x_pad.shape[2], x_pad.shape[3]

    kernel = functools.partial(
        _inception_conv_kernel, kh=kh, kw=kw, stride=stride, Ho=ho, Wo=wo
    )

    itemsize = jnp.dtype(x_nchw.dtype).itemsize
    cost = pl.CostEstimate(
        flops=2 * n * cout * (kh * kw * cin) * ho * wo,
        transcendentals=0,
        bytes_accessed=(
            n * cin * hp * wp * itemsize            # input
            + cout * kh * kw * cin * itemsize        # weights
            + cout * itemsize                        # bias
            + n * cout * ho * wo * itemsize          # output
        ),
    )

    out_flat = pl.pallas_call(
        kernel,
        out_shape=jax.ShapeDtypeStruct((n, cout, ho * wo), x_nchw.dtype),
        grid=(n,),
        in_specs=[
            pl.BlockSpec((1, cin, hp, wp), lambda i: (i, 0, 0, 0)),
            pl.BlockSpec((cout, kh * kw * cin), lambda i: (0, 0)),
            pl.BlockSpec((cout, 1), lambda i: (0, 0)),
        ],
        out_specs=pl.BlockSpec((1, cout, ho * wo), lambda i: (i, 0, 0)),
        compiler_params=pltpu.CompilerParams(dimension_semantics=("parallel",)),
        cost_estimate=cost,
    )(x_pad, w_slab, b_col)

    # Free reshape back to NCHW (no HBM transpose).
    return out_flat.reshape(n, cout, ho, wo)


def _reference_forward(x_nchw, weights, biases, *, stride, padding):
    """Pure-JAX reference (4 separate convs + concat) for correctness check."""
    outs = []
    for w, b in zip(weights, biases):
        y = jax.lax.conv_general_dilated(
            x_nchw.astype(jnp.float32),
            w.astype(jnp.float32),
            window_strides=(stride, stride),
            padding=[(padding, padding), (padding, padding)],
            dimension_numbers=("NCHW", "OIHW", "NCHW"),
        )
        outs.append(y + b.reshape(1, -1, 1, 1))
    return jnp.concatenate(outs, axis=1)


if __name__ == "__main__":
    # Module config: Inception(in_channels=4, out_channels=[4,4,4,4],
    #                          kernel_size=3, stride=1, padding=1)
    in_channels = 4
    out_channels = [4, 4, 4, 4]
    kernel_size = 3
    stride = 1
    padding = 1

    key = jax.random.PRNGKey(0)
    keys = jax.random.split(key, 1 + 2 * len(out_channels))

    # Deterministic parameter init (PyTorch-style uniform bound 1/sqrt(fan_in)).
    fan_in = in_channels * kernel_size * kernel_size
    bound = 1.0 / (fan_in ** 0.5)
    weights = []
    biases = []
    for i, oc in enumerate(out_channels):
        wk = jax.random.uniform(
            keys[1 + 2 * i], (oc, in_channels, kernel_size, kernel_size),
            minval=-bound, maxval=bound, dtype=jnp.float32)
        bk = jax.random.uniform(
            keys[2 + 2 * i], (oc,), minval=-bound, maxval=bound, dtype=jnp.float32)
        weights.append(wk)
        biases.append(bk)

    x = jax.random.normal(keys[0], (2, in_channels, 16, 16), dtype=jnp.float32)

    # One-time prepack (hoisted out of the forward path).
    w_slab, b_col, kh, kw = prepack_inception_params(weights, biases)

    out = inception_forward(
        x, w_slab, b_col, kh=kh, kw=kw, stride=stride, padding=padding
    )
    out = jax.block_until_ready(out)

    ref = _reference_forward(x, weights, biases, stride=stride, padding=padding)
    assert out.shape == (2, sum(out_channels), 16, 16), out.shape
    assert jnp.allclose(out, ref, atol=1e-4, rtol=1e-4), "mismatch vs reference conv"

    print("KERNEL_OK")
</pallas_src>

<mosaic_0001>
module attributes {stable_mosaic.version = 11 : i64} {
  func.func @_inception_conv_kernel(%arg0: i32, %arg1: memref<1x4x18x18xf32, #tpu.memory_space<vmem>>, %arg2: memref<16x36xf32, #tpu.memory_space<vmem>>, %arg3: memref<16x1xf32, #tpu.memory_space<vmem>>, %arg4: memref<1x16x256xf32, #tpu.memory_space<vmem>>) attributes {dimension_semantics = [#tpu.dimension_semantics<parallel>], iteration_bounds = array<i64: 2>, scalar_prefetch = 0 : i64, scratch_operands = 0 : i64, tpu.core_type = #tpu.core_type<tc>, window_params = [{transform_indices = @transform_0, window_bounds = array<i64: 1, 4, 18, 18>}, {pipeline_mode = #tpu.pipeline_mode<synchronous>, transform_indices = @transform_1, window_bounds = array<i64: 16, 36>}, {pipeline_mode = #tpu.pipeline_mode<synchronous>, transform_indices = @transform_2, window_bounds = array<i64: 16, 1>}, {transform_indices = @transform_3, window_bounds = array<i64: 1, 16, 256>}]} {
    %c0 = arith.constant 0 : index
    %c0_0 = arith.constant 0 : index
    %c0_1 = arith.constant 0 : index
    %c0_2 = arith.constant 0 : index
    %0 = vector.load %arg1[%c0, %c0_0, %c0_1, %c0_2] : memref<1x4x18x18xf32, #tpu.memory_space<vmem>>, vector<1x4x18x18xf32>
    %1 = vector.shape_cast %0 : vector<1x4x18x18xf32> to vector<4x18x18xf32>
    %2 = vector.extract_strided_slice %1 {offsets = [0, 0, 0], sizes = [4, 16, 16], strides = [1, 1, 1]} : vector<4x18x18xf32> to vector<4x16x16xf32>
    %3 = vector.shape_cast %2 : vector<4x16x16xf32> to vector<4x256xf32>
    %4 = vector.extract_strided_slice %1 {offsets = [0, 0, 1], sizes = [4, 16, 16], strides = [1, 1, 1]} : vector<4x18x18xf32> to vector<4x16x16xf32>
    %5 = vector.shape_cast %4 : vector<4x16x16xf32> to vector<4x256xf32>
    %6 = vector.extract_strided_slice %1 {offsets = [0, 0, 2], sizes = [4, 16, 16], strides = [1, 1, 1]} : vector<4x18x18xf32> to vector<4x16x16xf32>
    %7 = vector.shape_cast %6 : vector<4x16x16xf32> to vector<4x256xf32>
    %8 = vector.extract_strided_slice %1 {offsets = [0, 1, 0], sizes = [4, 16, 16], strides = [1, 1, 1]} : vector<4x18x18xf32> to vector<4x16x16xf32>
    %9 = vector.shape_cast %8 : vector<4x16x16xf32> to vector<4x256xf32>
    %10 = vector.extract_strided_slice %1 {offsets = [0, 1, 1], sizes = [4, 16, 16], strides = [1, 1, 1]} : vector<4x18x18xf32> to vector<4x16x16xf32>
    %11 = vector.shape_cast %10 : vector<4x16x16xf32> to vector<4x256xf32>
    %12 = vector.extract_strided_slice %1 {offsets = [0, 1, 2], sizes = [4, 16, 16], strides = [1, 1, 1]} : vector<4x18x18xf32> to vector<4x16x16xf32>
    %13 = vector.shape_cast %12 : vector<4x16x16xf32> to vector<4x256xf32>
    %14 = vector.extract_strided_slice %1 {offsets = [0, 2, 0], sizes = [4, 16, 16], strides = [1, 1, 1]} : vector<4x18x18xf32> to vector<4x16x16xf32>
    %15 = vector.shape_cast %14 : vector<4x16x16xf32> to vector<4x256xf32>
    %16 = vector.extract_strided_slice %1 {offsets = [0, 2, 1], sizes = [4, 16, 16], strides = [1, 1, 1]} : vector<4x18x18xf32> to vector<4x16x16xf32>
    %17 = vector.shape_cast %16 : vector<4x16x16xf32> to vector<4x256xf32>
    %18 = vector.extract_strided_slice %1 {offsets = [0, 2, 2], sizes = [4, 16, 16], strides = [1, 1, 1]} : vector<4x18x18xf32> to vector<4x16x16xf32>
    %19 = vector.shape_cast %18 : vector<4x16x16xf32> to vector<4x256xf32>
    %20 = tpu.concatenate %3, %5, %7, %9, %11, %13, %15, %17, %19 in 0 : vector<4x256xf32>, vector<4x256xf32>, vector<4x256xf32>, vector<4x256xf32>, vector<4x256xf32>, vector<4x256xf32>, vector<4x256xf32>, vector<4x256xf32>, vector<4x256xf32> -> vector<36x256xf32>
    %c0_3 = arith.constant 0 : index
    %c0_4 = arith.constant 0 : index
    %21 = vector.load %arg2[%c0_3, %c0_4] : memref<16x36xf32, #tpu.memory_space<vmem>>, vector<16x36xf32>
    %cst = arith.constant dense<0.000000e+00> : vector<16x256xf32>
    %22 = tpu.matmul %21, %20, %cst {dimension_numbers = #tpu.dot_dimension_numbers<[1], [0], [0], [1], [0, 0, 1, 1], [], []>} : vector<16x36xf32>, vector<36x256xf32>, vector<16x256xf32> -> vector<16x256xf32>
    %c0_5 = arith.constant 0 : index
    %c0_6 = arith.constant 0 : index
    %23 = vector.load %arg3[%c0_5, %c0_6] : memref<16x1xf32, #tpu.memory_space<vmem>>, vector<16x1xf32>
    %24 = vector.broadcast %23 : vector<16x1xf32> to vector<16x256xf32>
    %25 = arith.addf %22, %24 : vector<16x256xf32>
    %c0_7 = arith.constant 0 : index
    %c0_8 = arith.constant 0 : index
    %c0_9 = arith.constant 0 : index
    %26 = vector.load %arg4[%c0_7, %c0_8, %c0_9] : memref<1x16x256xf32, #tpu.memory_space<vmem>>, vector<1x16x256xf32>
    %27 = vector.shape_cast %26 : vector<1x16x256xf32> to vector<16x256xf32>
    %28 = vector.shape_cast %25 : vector<16x256xf32> to vector<1x16x256xf32>
    tpu.vector_store %arg4[%c0_7, %c0_8, %c0_9], %28 {strides = array<i32>} : memref<1x16x256xf32, #tpu.memory_space<vmem>>, vector<1x16x256xf32>,
    return
  }
  func.func @transform_0(%arg0: i32) -> (i32, i32, i32, i32) {
    %c0_i32 = arith.constant 0 : i32
    %c0_i32_0 = arith.constant 0 : i32
    %c0_i32_1 = arith.constant 0 : i32
    %c0_i32_2 = arith.constant 0 : i32
    return %arg0, %c0_i32, %c0_i32_0, %c0_i32_1 : i32, i32, i32, i32
  }
  func.func @transform_1(%arg0: i32) -> (i32, i32) {
    %c0_i32 = arith.constant 0 : i32
    %c0_i32_0 = arith.constant 0 : i32
    %c0_i32_1 = arith.constant 0 : i32
    return %c0_i32, %c0_i32_0 : i32, i32
  }
  func.func @transform_2(%arg0: i32) -> (i32, i32) {
    %c0_i32 = arith.constant 0 : i32
    %c0_i32_0 = arith.constant 0 : i32
    %c0_i32_1 = arith.constant 0 : i32
    return %c0_i32, %c0_i32_0 : i32, i32
  }
  func.func @transform_3(%arg0: i32) -> (i32, i32, i32) {
    %c0_i32 = arith.constant 0 : i32
    %c0_i32_0 = arith.constant 0 : i32
    %c0_i32_1 = arith.constant 0 : i32
    return %arg0, %c0_i32, %c0_i32_0 : i32, i32, i32
  }
}

</mosaic_0001>

<bundles_post_ra>
// kernel: inception_forward.1
= control target key start
LH: loop header
LB: loop body
LE: loop exit
PB: predicated region body
PF: predicated region fallthrough
CT: control target
= control target key end

     0   :  { %s2683_s12 = smov 0   ;;  %s4043_s0 = inlined_call_operand.vmem [shape: f32[2,4,18,18], index: 0, kind: input, shape index: {}]   ;;  %s4044_s1 = inlined_call_operand.vmem [shape: f32[16,36], index: 1, kind: input, shape index: {}]   ;;  %s4045_s2 = inlined_call_operand.vmem [shape: f32[16,1], index: 2, kind: input, shape index: {}]   ;;  %s4046_s3 = inlined_call_operand.vmem [shape: f32[2,16,256], index: 3, kind: output, shape index: {}]  }
   0x1 LB: > { %s2208_s13 = sadd.s32 4294967295, %s2649_s12   ;;  %p2212_p0 = scmp.ge.s32.totalorder %s2649_s12, 1  ;;  %s2649_s12 = sphi %s2683_s12, %s13_s12  }
   0x2   : > { %p137_p1 = scmp.lt.s32.totalorder %s2649_s12, 3 }
   0x4   : > { %p138_p2 = pnand %p2212_p0, %p137_p1 }
   0x6   : > { %141 = sbr.rel (%p138_p2) target bundleno = 744 (0x2e8), region = 32 }
   0xb   : > { %p161_p3 = scmp.lt.s32.totalorder %s2208_s13, 1  ;;  %v2651_v0 = vmov 1983009808   ;;  %vm184_vm0 = vcmask 1047556   ;;  %v2652_v11 = vmov 1934713408  }
   0xc   : > { %v189_v1 = vunpack.c.l.s4 %v2651_v0  ;;  %v213_v12 = vunpack.c.l.s4 %v2652_v11  ;;  %s2653_s18 = smov 127   ;;  %s2654_s19 = smov 64   ;;  %vm797_vm1 = vcmask 1046528   ;;  %vm1420_vm2 = vcmask 1045504  }
   0xd   : > { %s4082_s13 = smov (!%p161_p3, %s2208_s13), 1  ;;  %s2655_s20 = smov 32   ;;  %vm352_vm3 = vcmask 130048   ;;  %vm354_vm4 = vcmask 261120   ;;  %vm356_vm5 = vcmask 392192   ;;  %vm358_vm6 = vcmask 523264  }
   0xe   : > { %s2235_s14 = smul.u32 96, %s4082_s13  ;;  %v2722_v10 = vunpack.c.0.s8 %v189_v1  ;;  %v2753_v31 = vunpack.c.0.s8 %v213_v12  ;;  %s2656_s21 = smov 48   ;;  %vm360_vm7 = vcmask 654336   ;;  %vm362_vm8 = vcmask 785408  }
   0xf   : > { %s2657_s22 = smov 16   ;;  %s2658_s23 = smov 96   ;;  %vm364_vm9 = vcmask 916480   ;;  %vm2067_vm10 = vcmask 1043456   ;;  %vm2090_vm11 = vcmask 293888  }
  0x10   : > { %s2697_s17 = scalar_lea.vmem %s4043_s0, %s2235_s14  ;;  %s2659_s24 = smov 112  }
  0x11   : > { %v2700_v2 = vld [vmem:[%s2697_s17] sm:$0xff]  ;;  %v2703_v3 = vld [vmem:[%s2697_s17 + $0x8] sm:$0xff]  ;;  %v2706_v4 = vld [vmem:[%s2697_s17 + $0x18] sm:$0xff]  ;;  %s2660_s25 = smov 80   ;;  %s2661_s26 = smov 126  }
  0x12   : > { %v2710_v5 = vpack.i.bf16 %v2703_v3, %v2700_v2  ;;  %v2713_v6 = vld [vmem:[%s2697_s17 + $0x20] sm:$0xff]  ;;  %v2716_v7 = vld [vmem:[%s2697_s17 + $0x30] sm:$0xff]  ;;  %v2719_v8 = vld [vmem:[%s2697_s17 + $0x38] sm:$0xff]  ;;  %v186_v9 = vrot.slane %v2700_v2, 4  ;;  %v198_v15 = vrot.slane %v2706_v4, 4  ;;  %v242_v16 = vrot.slane %v2703_v3, 4 }
  0x13   : > { %v2725_v13 = vld [vmem:[%s2697_s17 + $0x48] sm:$0xff]  ;;  %v2728_v14 = vld [vmem:[%s2697_s17 + $0x50] sm:$0xff]  ;;  %v254_v17 = vrot.slane %v2713_v6, 4  ;;  %v183_v18 = vrot.slane %v2716_v7, 4  ;;  %v240_v21 = vrot.slane %v2719_v8, 4  ;;  %s2224_s8 = sshll.u32 %s4082_s13, 5 }
  0x14   : > { %2257 = vrot.lane.b32.xlu1 %v2710_v5, %s2653_s18  ;;  %v187_v19 = vsel %vm184_vm0, %v2716_v7, %v186_v9  ;;  %v196_v20 = vrot.slane %v2725_v13, 4  ;;  %v252_v22 = vrot.slane %v2728_v14, 4  ;;  %v199_v24 = vsel %vm184_vm0, %v2725_v13, %v198_v15  ;;  %s170_s11 = scalar_lea.vmem %s4046_s3, %s2224_s8 }
  0x15   : > { %v195_v23 = vperm.slane %v187_v19, %v2722_v10  ;;  %v243_v25 = vsel %vm184_vm0, %v2719_v8, %v242_v16  ;;  %v255_v26 = vsel %vm184_vm0, %v2728_v14, %v254_v17  ;;  %v207_v27 = vperm.slane %v199_v24, %v2722_v10 }
  0x16   : > { %v251_v28 = vperm.slane %v243_v25, %v2722_v10  ;;  %v263_v29 = vperm.slane %v255_v26, %v2722_v10  ;;  %v185_v30 = vsel %vm184_vm0, %v183_v18, %v2700_v2  ;;  %v197_v33 = vsel %vm184_vm0, %v196_v20, %v2706_v4  ;;  %v173_v20 = vld [vmem:[%s2697_s17 + $0x10] sm:$0x3] }
  0x17   : > { %v191_v32 = vperm.slane %v185_v30, %v2722_v10  ;;  %v241_v34 = vsel %vm184_vm0, %v240_v21, %v2703_v3  ;;  %v220_v35 = vrot.slane %v207_v27, 4  ;;  %v222_v36 = vrot.slane %v195_v23, 4 }
  0x18   : > { %v276_v37 = vrot.slane %v263_v29, 4  ;;  %v203_v38 = vperm.slane %v197_v33, %v2722_v10  ;;  %v278_v39 = vrot.slane %v251_v28, 4  ;;  %v247_v41 = vperm.slane %v241_v34, %v2722_v10  ;;  %v2815_v33 = vld [vmem:[%s2697_s17 + $0x40] sm:$0x3] }
  0x19   : > { %v210_v40 = vrot.slane %v191_v32, 4  ;;  %v253_v42 = vsel %vm184_vm0, %v252_v22, %v2713_v6  ;;  %v221_v43 = vsel %vm184_vm0, %v220_v35, %v195_v23  ;;  %v223_v54 = vsel %vm184_vm0, %v207_v27, %v222_v36 }
  0x1a   : > { %v277_v44 = vsel %vm184_vm0, %v276_v37, %v251_v28  ;;  %v208_v45 = vrot.slane %v203_v38, 4  ;;  %v259_v46 = vperm.slane %v253_v42, %v2722_v10  ;;  %v227_v47 = vperm.slane %v221_v43, %v2753_v31  ;;  %v2810_v28 = vld [vmem:[%s2697_s17 + $0x28] sm:$0x3] }
  0x1b   : > { %v2769_v48 = vperm.slane %v277_v44, %v2753_v31  ;;  %v211_v49 = vsel %vm184_vm0, %v203_v38, %v210_v40  ;;  %v266_v50 = vrot.slane %v247_v41, 4  ;;  %v231_v58 = vperm.slane %v223_v54, %v2753_v31 }
  0x1c   : > { %v219_v51 = vperm.slane %v211_v49, %v2753_v31  ;;  %v264_v52 = vrot.slane %v259_v46, 4  ;;  %v209_v53 = vsel %vm184_vm0, %v208_v45, %v191_v32  ;;  %v279_v62 = vsel %vm184_vm0, %v263_v29, %v278_v39 }
  0x1d   : > { %v2271_v55 = vpack.i.bf16 %v2769_v48, %v227_v47  ;;  %v267_v56 = vsel %vm184_vm0, %v259_v46, %v266_v50  ;;  %v2778_v57 = vperm.slane %v209_v53, %v2753_v31  ;;  %v287_v1 = vperm.slane %v279_v62, %v2753_v31 }
  0x1e   : > { %v275_v59 = vperm.slane %v267_v56, %v2753_v31  ;;  %v234_v60 = vrot.slane %v219_v51, 4  ;;  %v265_v61 = vsel %vm184_vm0, %v264_v52, %v247_v41  ;;  %v2793_v15 = vpack.i.bf16 %v2713_v6, %v2706_v4 }
  0x1f   : > { %2272 = vrot.lane.b32.xlu1 %v2271_v55, %s2654_s19  ;;  %v232_v63 = vrot.slane %v2778_v57, 4  ;;  %v2787_v0 = vperm.slane %v265_v61, %v2753_v31  ;;  %v238_v17 = vrot.slane %v231_v58, 4  ;;  %v294_v18 = vrot.slane %v287_v1, 4 }
  0x20   : > { %v290_v9 = vrot.slane %v275_v59, 4  ;;  %v2266_v11 = vpack.i.bf16 %v275_v59, %v219_v51  ;;  %v235_v12 = vsel %vm184_vm0, 0.0, %v234_v60  ;;  %2262 = vrot.lane.b32.xlu2 %v2793_v15, %s2653_s18  ;;  %v236_v24 = vrot.slane %v227_v47, 4 }
  0x21   : > { %v288_v16 = vrot.slane %v2787_v0, 4  ;;  %v233_v22 = vsel %vm184_vm0, 0.0, %v232_v63  ;;  %v799_v25 = vrot.slane %v2703_v3, 1  ;;  %v798_v26 = vrot.slane %v2700_v2, 1  ;;  %v2819_v3 = vld [vmem:[%s2697_s17 + $0x58] sm:$0x3] }
  0x22   : > { %2267 = vrot.lane.b32.xlu0 %v2266_v11, %s2655_s20  ;;  %v291_v19 = vsel %vm184_vm0, 0.0, %v290_v9  ;;  %v2807_v27 = vpack.i.bf16 %v2728_v14, %v2725_v13  ;;  %v239_v29 = vsel %vm184_vm0, 0.0, %v238_v17  ;;  %v295_v30 = vsel %vm184_vm0, 0.0, %v294_v18 }
  0x23   : > { %v2286_v21 = vpack.i.bf16 %v291_v19, %v235_v12  ;;  %v289_v23 = vsel %vm184_vm0, 0.0, %v288_v16  ;;  %v2276_v32 = vpack.i.bf16 %v287_v1, %v231_v58  ;;  %v801_v34 = vrot.slane %v173_v20, 1 }
  0x24   : > { %v2281_v35 = vpack.i.bf16 %v289_v23, %v233_v22  ;;  %v292_v36 = vrot.slane %v2769_v48, 4  ;;  %v803_v2 = vrot.slane %v2706_v4, 1  ;;  %v804_v37 = vrot.slane %v2713_v6, 1 }
  0x25   : > { %v237_v38 = vsel %vm184_vm0, 0.0, %v236_v24  ;;  %v806_v39 = vrot.slane %v2810_v28, 1  ;;  %v808_v40 = vrot.slane %v2716_v7, 1  ;;  %v2828_v41 = vsel %vm797_vm1, %v798_v26, %v799_v25 }
  0x26   : > { %v809_v42 = vrot.slane %v2719_v8, 1  ;;  %v811_v43 = vrot.slane %v2815_v33, 1  ;;  %v813_v44 = vrot.slane %v2725_v13, 1  ;;  %v2834_v45 = vsel %vm797_vm1, %v799_v25, %v801_v34 }
  0x27   : > { %2287 = vrot.lane.b32.xlu1 %v2286_v21, %s2656_s21  ;;  %v2837_v46 = vsel %vm797_vm1, %v803_v2, %v804_v37  ;;  %v814_v47 = vrot.slane %v2728_v14, 1  ;;  %v816_v48 = vrot.slane %v2819_v3, 1  ;;  %v293_v49 = vsel %vm184_vm0, 0.0, %v292_v36 }
  0x28   : > { %2277 = vrot.lane.b32.xlu2 %v2276_v32, %s2658_s23  ;;  %v2845_v50 = vsel %vm797_vm1, %v804_v37, %v806_v39  ;;  %v2848_v51 = vsel %vm797_vm1, %v808_v40, %v809_v42  ;;  %v2851_v52 = vsel %vm797_vm1, %v809_v42, %v811_v43  ;;  %v2296_v60 = vpack.i.bf16 %v295_v30, %v239_v29 }
  0x29   : > { %v2854_v53 = vsel %vm797_vm1, %v813_v44, %v814_v47  ;;  %v2857_v54 = vsel %vm797_vm1, %v814_v47, %v816_v48  ;;  %v826_v55 = vrot.slane %v2848_v51, 4  ;;  %v882_v56 = vrot.slane %v2851_v52, 4 }
  0x2a   : > { %2282 = vrot.lane.b32.xlu0 %v2281_v35, %s2657_s22  ;;  %v838_v58 = vrot.slane %v2854_v53, 4  ;;  %v894_v59 = vrot.slane %v2857_v54, 4  ;;  %v2291_v61 = vpack.i.bf16 %v293_v49, %v237_v38  ;;  %v828_v18 = vrot.slane %v2828_v41, 4 }
  0x2b   : > { %v827_v62 = vsel %vm184_vm0, %v826_v55, %v2828_v41  ;;  %v883_v63 = vsel %vm184_vm0, %v882_v56, %v2834_v45  ;;  %v840_v19 = vrot.slane %v2837_v46, 4  ;;  %v884_v22 = vrot.slane %v2834_v45, 4 }
  0x2c   : > { %v833_v1 = vperm.slane %v827_v62, %v2722_v10  ;;  %v839_v9 = vsel %vm184_vm0, %v838_v58, %v2837_v46  ;;  %v889_v11 = vperm.slane %v883_v63, %v2722_v10  ;;  %v895_v12 = vsel %vm184_vm0, %v894_v59, %v2845_v50 }
  0x2d   : > { %v845_v16 = vperm.slane %v839_v9, %v2722_v10  ;;  %v901_v17 = vperm.slane %v895_v12, %v2722_v10  ;;  %v896_v24 = vrot.slane %v2845_v50, 4  ;;  %v829_v30 = vsel %vm184_vm0, %v2848_v51, %v828_v18 }
  0x2e   : > { %v852_v20 = vrot.slane %v833_v1, 4  ;;  %v908_v21 = vrot.slane %v889_v11, 4  ;;  %v885_v32 = vsel %vm184_vm0, %v2851_v52, %v884_v22  ;;  %v2301_v34 = vpack.i.bf16 %v2719_v8, %v2716_v7 }
  0x2f   : > { %2307 = vrot.lane.b32.xlu1 %v2807_v27, %s2653_s18  ;;  %v841_v35 = vsel %vm184_vm0, %v2854_v53, %v840_v19  ;;  %v850_v36 = vrot.slane %v845_v16, 4  ;;  %v906_v2 = vrot.slane %v901_v17, 4  ;;  %v837_v39 = vperm.slane %v829_v30, %v2722_v10 }
  0x30   : > { %2292 = vrot.lane.b32.xlu2 %v2291_v61, %s2660_s25  ;;  %v853_v23 = vsel %vm184_vm0, %v845_v16, %v852_v20  ;;  %v909_v25 = vsel %vm184_vm0, %v901_v17, %v908_v21  ;;  %v893_v40 = vperm.slane %v885_v32, %v2722_v10  ;;  %v897_v42 = vsel %vm184_vm0, %v2857_v54, %v896_v24 }
  0x31   : > { %v861_v26 = vperm.slane %v853_v23, %v2753_v31  ;;  %v917_v29 = vperm.slane %v909_v25, %v2753_v31  ;;  %v864_v43 = vrot.slane %v837_v39, 4  ;;  %v849_v47 = vperm.slane %v841_v35, %v2722_v10 }
  0x32   : > { %2297 = vrot.lane.b32.xlu0 %v2296_v60, %s2659_s24  ;;  %v920_v44 = vrot.slane %v893_v40, 4  ;;  %v905_v48 = vperm.slane %v897_v42, %v2722_v10  ;;  %v851_v49 = vsel %vm184_vm0, %v850_v36, %v833_v1  ;;  %v907_v55 = vsel %vm184_vm0, %v906_v2, %v889_v11 }
  0x33   : > { %v876_v37 = vrot.slane %v861_v26, 4  ;;  %v932_v38 = vrot.slane %v917_v29, 4  ;;  %v2913_v56 = vperm.slane %v907_v55, %v2753_v31  ;;  %v865_v59 = vsel %vm184_vm0, %v849_v47, %v864_v43 }
  0x34   : > { %v921_v60 = vsel %vm184_vm0, %v905_v48, %v920_v44  ;;  %v862_v63 = vrot.slane %v849_v47, 4  ;;  %v918_v1 = vrot.slane %v905_v48, 4  ;;  %v873_v12 = vperm.slane %v865_v59, %v2753_v31 }
  0x35   : > { %v877_v7 = vsel %vm184_vm0, 0.0, %v876_v37  ;;  %v933_v8 = vsel %vm184_vm0, 0.0, %v932_v38  ;;  %v930_v62 = vrot.slane %v2913_v56, 4  ;;  %v929_v16 = vperm.slane %v921_v60, %v2753_v31 }
  0x36   : > { %v2341_v58 = vpack.i.bf16 %v933_v8, %v877_v7  ;;  %v863_v18 = vsel %vm184_vm0, %v862_v63, %v837_v39  ;;  %v919_v19 = vsel %vm184_vm0, %v918_v1, %v893_v40  ;;  %v880_v24 = vrot.slane %v873_v12, 4 }
  0x37   : > { %2317 = vrot.lane.b32.xlu1 %v2793_v15, %s2661_s26  ;;  %v2910_v15 = vperm.slane %v851_v49, %v2753_v31  ;;  %v931_v11 = vsel %vm184_vm0, 0.0, %v930_v62  ;;  %v2356_v20 = vpack.i.bf16 %v929_v16, %v873_v12  ;;  %v869_v21 = vperm.slane %v863_v18, %v2753_v31 }
  0x38   : > { %2322 = vrot.lane.b32.xlu2 %v2301_v34, %s2661_s26  ;;  %v925_v22 = vperm.slane %v919_v19, %v2753_v31  ;;  %v936_v25 = vrot.slane %v929_v16, 4  ;;  %v881_v30 = vsel %vm184_vm0, 0.0, %v880_v24  ;;  %v1439_v39 = vrot.slane %v2819_v3, 2 }
  0x39   : > { %v874_v61 = vrot.slane %v2910_v15, 4  ;;  %v878_v36 = vrot.slane %v869_v21, 4  ;;  %v1429_v3 = vrot.slane %v2810_v28, 2 }
  0x3a   : > { %2302 = vrot.lane.b32.xlu0 %v2301_v34, %s2653_s18  ;;  %v2346_v23 = vpack.i.bf16 %v925_v22, %v869_v21  ;;  %v937_v32 = vsel %vm184_vm0, 0.0, %v936_v25  ;;  %v2336_v34 = vpack.i.bf16 %v917_v29, %v861_v26  ;;  %v934_v2 = vrot.slane %v925_v22, 4 }
  0x3b   : > { %v875_v9 = vsel %vm184_vm0, 0.0, %v874_v61  ;;  %v2361_v35 = vpack.i.bf16 %v937_v32, %v881_v30  ;;  %v2381_v26 = vpack.i.bf16 %v2857_v54, %v2854_v53 }
  0x3c   : > { %v2331_v17 = vpack.i.bf16 %v931_v11, %v875_v9  ;;  %v935_v37 = vsel %vm184_vm0, 0.0, %v934_v2 }
  0x3f   : > { %2342 = vrot.lane.b32.xlu1 %v2341_v58, %s2656_s21 }
  0x40   : > { %2332 = vrot.lane.b32.xlu2 %v2331_v17, %s2657_s22 }
  0x42   : > { %2312 = vrot.lane.b32.xlu0 %v2710_v5, %s2661_s26  ;;  %v2371_v5 = vpack.i.bf16 %v2845_v50, %v2837_v46  ;;  %v2946_v46 = vpack.i.bf16 %v2851_v52, %v2848_v51  ;;  %v2366_v50 = vpack.i.bf16 %v2834_v45, %v2828_v41  ;;  %v1436_v51 = vrot.slane %v2725_v13, 2 }
  0x43   : > { %v1437_v52 = vrot.slane %v2728_v14, 2  ;;  %v1426_v13 = vrot.slane %v2706_v4, 2  ;;  %v1427_v14 = vrot.slane %v2713_v6, 2 }
  0x45   : > { %v2964_v41 = vsel %vm1420_vm2, %v1436_v51, %v1437_v52  ;;  %v2967_v45 = vsel %vm1420_vm2, %v1437_v52, %v1439_v39  ;;  %v2980_v40 = vsel %vm1420_vm2, %v1426_v13, %v1427_v14  ;;  %v2984_v42 = vsel %vm1420_vm2, %v1427_v14, %v1429_v3 }
  0x46   : > { %v2396_v54 = vpack.i.bf16 %v2967_v45, %v2964_v41  ;;  %v2406_v8 = vpack.i.bf16 %v2984_v42, %v2980_v40 }
  0x47   : > { %2357 = vrot.lane.b32.xlu1 %v2356_v20, %s2658_s23 }
  0x48   : > { %2347 = vrot.lane.b32.xlu2 %v2346_v23, %s2654_s19 }
  0x4a   : > { %2327 = vrot.lane.b32.xlu0 %v2807_v27, %s2661_s26  ;;  %v879_v27 = vsel %vm184_vm0, 0.0, %v878_v36 }
  0x4b   : > { %v2351_v38 = vpack.i.bf16 %v935_v37, %v879_v27 }
  0x4f   : > { %2372 = vrot.lane.b32.xlu1 %v2371_v5, %s2653_s18 }
  0x50   : > { %2362 = vrot.lane.b32.xlu2 %v2361_v35, %s2659_s24 }
  0x52   : > { %2337 = vrot.lane.b32.xlu0 %v2336_v34, %s2655_s20 }
  0x57   : > { %2397 = vrot.lane.b32.xlu1 %v2396_v54, %s2653_s18 }
  0x58   : > { %2377 = vrot.lane.b32.xlu2 %v2946_v46, %s2653_s18 }
  0x5a   : > { %2352 = vrot.lane.b32.xlu0 %v2351_v38, %s2660_s25 }
  0x5f   : > { %2402 = vrot.lane.b32.xlu1 %v2381_v26, %s2661_s26 }
  0x60   : > { %2387 = vrot.lane.b32.xlu2 %v2366_v50, %s2661_s26 }
  0x62   : > { %2367 = vrot.lane.b32.xlu0 %v2366_v50, %s2653_s18 }
  0x68   : > { %1849 = vrot.lane.b32.xlu2 %v2964_v41, %s2661_s26 }
  0x6a   : > { %2382 = vrot.lane.b32.xlu0 %v2381_v26, %s2653_s18 }
  0x70   : > { %2407 = vrot.lane.b32.xlu2 %v2406_v8, %s2653_s18 }
  0x72   : > { %2392 = vrot.lane.b32.xlu0 %v2371_v5, %s2661_s26 }
  0x7a   : > { %v2958_v29 = vpop.permute.xlu2 %2262  ;;  %1851 = vrot.lane.b32.xlu0 %v2967_v45, %s2661_s26 }
  0x7b   : > { %v2265_v12 = vunpack.i.h.bf16 %v2958_v29 }
  0x7d   : > { %v475_v24 = vrot.slane %v2265_v12, 4 }
  0x82   : > { %v2278_v7 = vpop.permute.xlu2 %2277 }
  0x83   : > { %v2280_v25 = vunpack.i.h.bf16 %v2278_v7  ;;  %v2279_v5 = vunpack.i.l.bf16 %v2278_v7 }
  0x86   : > { %v2969_v53 = vpop.permute.xlu1 %2257 }
  0x87   : > { %v2260_v27 = vunpack.i.h.bf16 %v2969_v53  ;;  %v2259_v37 = vunpack.i.l.bf16 %v2969_v53 }
  0x89   : > { %v463_v7 = vrot.slane %v2260_v27, 4  ;;  %v407_v8 = vrot.slane %v2259_v37, 4 }
  0x8a   : > { %v2293_v28 = vpop.permute.xlu2 %2292 }
  0x8b   : > { %v2295_v1 = vunpack.i.h.bf16 %v2293_v28  ;;  %v2294_v9 = vunpack.i.l.bf16 %v2293_v28 }
  0x91   : > { %v2273_v4 = vpop.permute.xlu1 %2272 }
  0x92   : > { %v2275_v58 = vunpack.i.h.bf16 %v2273_v4  ;;  %v2274_v59 = vunpack.i.l.bf16 %v2273_v4  ;;  %v2996_v11 = vpop.permute.xlu2 %2322 }
  0x93   : > { %v2325_v38 = vunpack.i.h.bf16 %v2996_v11  ;;  %v2324_v14 = vunpack.i.l.bf16 %v2996_v11 }
  0x94   : > { %v2268_v6 = vpop.permute.xlu0 %2267 }
  0x95   : > { %v2270_v60 = vunpack.i.h.bf16 %v2268_v6  ;;  %v2269_v61 = vunpack.i.l.bf16 %v2268_v6  ;;  %v667_v28 = vrot.slane %v2325_v38, 4 }
  0x99   : > { %v2288_v43 = vpop.permute.xlu1 %2287 }
  0x9a   : > { %v2290_v47 = vunpack.i.h.bf16 %v2288_v43  ;;  %v2289_v48 = vunpack.i.l.bf16 %v2288_v43  ;;  %v3014_v52 = vpop.permute.xlu2 %2332 }
  0x9b   : > { %v2335_v3 = vunpack.i.h.bf16 %v3014_v52 }
  0x9c   : > { %v2283_v44 = vpop.permute.xlu0 %2282 }
  0x9d   : > { %v2285_v49 = vunpack.i.h.bf16 %v2283_v44  ;;  %v2284_v55 = vunpack.i.l.bf16 %v2283_v44 }
  0x9f   : > { %v366_v62 = vsel %vm352_vm3, %v2787_v0, %v2285_v49  ;;  %v353_v63 = vsel %vm352_vm3, %v2778_v57, %v2284_v55  ;;  %v2264_v0 = vunpack.i.l.bf16 %v2958_v29  ;;  %v611_v55 = vrot.slane %v2324_v14, 4 }
  0xa0   : > { %v367_v16 = vsel %vm354_vm4, %v366_v62, %v2270_v60  ;;  %v355_v17 = vsel %vm354_vm4, %v353_v63, %v2269_v61 }
  0xa1   : > { %v357_v18 = vsel %vm356_vm5, %v355_v17, %v2289_v48  ;;  %v368_v19 = vsel %vm356_vm5, %v367_v16, %v2290_v47  ;;  %v2308_v21 = vpop.permute.xlu1 %2307  ;;  %v419_v36 = vrot.slane %v2264_v0, 4 }
  0xa2   : > { %v359_v20 = vsel %vm358_vm6, %v357_v18, %v2274_v59  ;;  %v369_v57 = vsel %vm358_vm6, %v368_v19, %v2275_v58  ;;  %v2310_v32 = vunpack.i.h.bf16 %v2308_v21  ;;  %v2309_v2 = vunpack.i.l.bf16 %v2308_v21 }
  0xa3   : > { %v361_v22 = vsel %vm360_vm7, %v359_v20, %v2294_v9  ;;  %v370_v23 = vsel %vm360_vm7, %v369_v57, %v2295_v1  ;;  %v3033_v58 = vsel %vm352_vm3, %v2913_v56, %v2335_v3  ;;  %v2334_v59 = vunpack.i.l.bf16 %v3014_v52 }
  0xa4   : > { %v2298_v30 = vpop.permute.xlu0 %2297  ;;  %v363_v50 = vsel %vm362_vm8, %v361_v22, %v2279_v5  ;;  %v371_v26 = vsel %vm362_vm8, %v370_v23, %v2280_v25  ;;  %v473_v29 = vrot.slane %v2310_v32, 4  ;;  %v476_v51 = vsel %vm184_vm0, %v2310_v32, %v475_v24 }
  0xa5   : > { %v2300_v34 = vunpack.i.h.bf16 %v2298_v30  ;;  %v2299_v35 = vunpack.i.l.bf16 %v2298_v30  ;;  %v417_v13 = vrot.slane %v2309_v2, 4  ;;  %v420_v53 = vsel %vm184_vm0, %v2309_v2, %v419_v36 }
  0xa6   : > { %v484_v4 = vperm.slane %v476_v51, %v2722_v10  ;;  %v474_v43 = vsel %vm184_vm0, %v473_v29, %v2265_v12  ;;  %v428_v44 = vperm.slane %v420_v53, %v2722_v10 }
  0xa7   : > { %v3017_v39 = vsel %vm364_vm9, %v363_v50, %v2299_v35  ;;  %v3020_v54 = vsel %vm364_vm9, %v371_v26, %v2300_v34  ;;  %v418_v49 = vsel %vm184_vm0, %v417_v13, %v2264_v0  ;;  %v3039_v1 = vperm.slane %v474_v43, %v2722_v10 }
  0xa8   : > { %v497_v9 = vrot.slane %v484_v4, 4  ;;  %v3046_v56 = vperm.slane %v418_v49, %v2722_v10  ;;  %v441_v18 = vrot.slane %v428_v44, 4  ;;  %v3092_v43 = vsel %vm352_vm3, %v2910_v15, %v2334_v59 }
  0xa9   : > { %v3043_v17 = vpop.permute.xlu1 %2317 }
  0xaa   : > { %v2320_v25 = vunpack.i.h.bf16 %v3043_v17  ;;  %v2319_v5 = vunpack.i.l.bf16 %v3043_v17 }
  0xac   : > { %v2303_v6 = vpop.permute.xlu0 %2302 }
  0xad   : > { %v2305_v47 = vunpack.i.h.bf16 %v2303_v6  ;;  %v2304_v48 = vunpack.i.l.bf16 %v2303_v6 }
  0xaf   : > { %v461_v60 = vrot.slane %v2305_v47, 4  ;;  %v464_v61 = vsel %vm184_vm0, %v2305_v47, %v463_v7  ;;  %v405_v62 = vrot.slane %v2304_v48, 4  ;;  %v408_v63 = vsel %vm184_vm0, %v2304_v48, %v407_v8  ;;  %v3082_v8 = vpop.permute.xlu2 %2347 }
  0xb0   : > { %v472_v12 = vperm.slane %v464_v61, %v2722_v10  ;;  %v416_v16 = vperm.slane %v408_v63, %v2722_v10  ;;  %v2349_v11 = vunpack.i.l.bf16 %v3082_v8  ;;  %v625_v61 = vrot.slane %v2319_v5, 4 }
  0xb1   : > { %v462_v19 = vsel %vm184_vm0, %v461_v60, %v2260_v27  ;;  %v406_v0 = vsel %vm184_vm0, %v405_v62, %v2259_v37  ;;  %v429_v63 = vrot.slane %v3046_v56, 4 }
  0xb2   : > { %v3051_v20 = vperm.slane %v462_v19, %v2722_v10  ;;  %v499_v57 = vrot.slane %v472_v12, 4  ;;  %v3054_v21 = vperm.slane %v406_v0, %v2722_v10  ;;  %v443_v22 = vrot.slane %v416_v16, 4 }
  0xb3   : > { %v442_v23 = vsel %vm184_vm0, %v441_v18, %v416_v16  ;;  %v498_v24 = vsel %vm184_vm0, %v497_v9, %v472_v12 }
  0xb4   : > { %v487_v30 = vrot.slane %v3051_v20, 4  ;;  %v431_v32 = vrot.slane %v3054_v21, 4  ;;  %v2313_v34 = vpop.permute.xlu0 %2312  ;;  %v3063_v35 = vperm.slane %v442_v23, %v2753_v31  ;;  %v3066_v36 = vperm.slane %v498_v24, %v2753_v31 }
  0xb5   : > { %v2315_v2 = vunpack.i.h.bf16 %v2313_v34  ;;  %v2314_v27 = vunpack.i.l.bf16 %v2313_v34  ;;  %v444_v37 = vsel %vm184_vm0, %v428_v44, %v443_v22  ;;  %v500_v50 = vsel %vm184_vm0, %v484_v4, %v499_v57 }
  0xb6   : > { %v2416_v26 = vpack.i.bf16 %v3066_v36, %v3063_v35  ;;  %v3073_v29 = vperm.slane %v444_v37, %v2753_v31  ;;  %v3076_v51 = vperm.slane %v500_v50, %v2753_v31  ;;  %v432_v52 = vsel %vm184_vm0, %v3046_v56, %v431_v32 }
  0xb7   : > { %v668_v13 = vsel %vm184_vm0, %v667_v28, %v2315_v2  ;;  %v669_v53 = vrot.slane %v2315_v2, 4  ;;  %v612_v3 = vsel %vm184_vm0, %v611_v55, %v2314_v27  ;;  %v613_v7 = vrot.slane %v2314_v27, 4  ;;  %v3104_v55 = vpop.permute.xlu1 %2342 }
  0xb8   : > { %v3085_v4 = vperm.slane %v668_v13, %v2722_v10  ;;  %2417 = vrot.lane.b32.xlu2 %v2416_v26, %s2654_s19  ;;  %v2421_v6 = vpack.i.bf16 %v3076_v51, %v3073_v29  ;;  %v2350_v28 = vunpack.i.h.bf16 %v3082_v8  ;;  %v3100_v48 = vperm.slane %v432_v52, %v2753_v31 }
  0xb9   : > { %v670_v44 = vsel %vm184_vm0, %v2325_v38, %v669_v53  ;;  %v614_v47 = vsel %vm184_vm0, %v2324_v14, %v613_v7  ;;  %v488_v49 = vsel %vm184_vm0, %v3039_v1, %v487_v30  ;;  %v3108_v15 = vperm.slane %v612_v3, %v2722_v10 }
  0xba   : > { %v678_v60 = vperm.slane %v670_v44, %v2722_v10  ;;  %v622_v59 = vperm.slane %v614_v47, %v2722_v10  ;;  %2422 = vrot.lane.b32.xlu1 %v2421_v6, %s2658_s23  ;;  %v485_v38 = vrot.slane %v3039_v1, 4  ;;  %v681_v14 = vrot.slane %v2320_v25, 4  ;;  %v3143_v44 = vpop.permute.xlu2 %2362 }
  0xbb   : > { %v3115_v62 = vperm.slane %v488_v49, %v2753_v31  ;;  %v2345_v12 = vunpack.i.h.bf16 %v3104_v55  ;;  %v2344_v16 = vunpack.i.l.bf16 %v3104_v55  ;;  %v457_v17 = vrot.slane %v3063_v35, 4 }
  0xbc   : > { %v2328_v9 = vpop.permute.xlu0 %2327  ;;  %v693_v18 = vrot.slane %v3085_v4, 4  ;;  %v705_v57 = vrot.slane %v678_v60, 4  ;;  %v637_v22 = vrot.slane %v3108_v15, 4  ;;  %v649_v23 = vrot.slane %v622_v59, 4 }
  0xbd   : > { %v2411_v19 = vpack.i.bf16 %v3115_v62, %v3100_v48  ;;  %v2330_v1 = vunpack.i.h.bf16 %v2328_v9  ;;  %v2329_v0 = vunpack.i.l.bf16 %v2328_v9  ;;  %v513_v56 = vrot.slane %v3066_v36, 4 }
  0xbe   : > { %v430_v27 = vsel %vm184_vm0, %v429_v63, %v3054_v21  ;;  %v486_v37 = vsel %vm184_vm0, %v485_v38, %v3051_v20  ;;  %v455_v26 = vrot.slane %v3100_v48, 4  ;;  %v511_v52 = vrot.slane %v3115_v62, 4 }
  0xbf   : > { %2412 = vrot.lane.b32.xlu0 %v2411_v19, %s2655_s20  ;;  %v679_v24 = vrot.slane %v2330_v1, 4  ;;  %v682_v30 = vsel %vm184_vm0, %v2330_v1, %v681_v14  ;;  %v623_v32 = vrot.slane %v2329_v0, 4  ;;  %v626_v34 = vsel %vm184_vm0, %v2329_v0, %v625_v61 }
  0xc0   : > { %v690_v35 = vperm.slane %v682_v30, %v2722_v10  ;;  %v634_v2 = vperm.slane %v626_v34, %v2722_v10  ;;  %v3146_v20 = vperm.slane %v430_v27, %v2753_v31  ;;  %v456_v34 = vsel %vm184_vm0, 0.0, %v455_v26 }
  0xc1   : > { %v680_v36 = vsel %vm184_vm0, %v679_v24, %v2320_v25  ;;  %v624_v50 = vsel %vm184_vm0, %v623_v32, %v2319_v5  ;;  %v3149_v25 = vperm.slane %v486_v37, %v2753_v31  ;;  %v514_v32 = vsel %vm184_vm0, 0.0, %v513_v56 }
  0xc2   : > { %v686_v13 = vperm.slane %v680_v36, %v2722_v10  ;;  %v703_v53 = vrot.slane %v690_v35, 4  ;;  %v630_v3 = vperm.slane %v624_v50, %v2722_v10  ;;  %v647_v7 = vrot.slane %v634_v2, 4  ;;  %v2378_v26 = vpop.permute.xlu2 %2377 }
  0xc3   : > { %v650_v6 = vsel %vm184_vm0, %v634_v2, %v649_v23  ;;  %v706_v21 = vsel %vm184_vm0, %v690_v35, %v705_v57  ;;  %v512_v35 = vsel %vm184_vm0, 0.0, %v511_v52  ;;  %v453_v2 = vrot.slane %v3146_v20, 4 }
  0xc4   : > { %v691_v5 = vrot.slane %v686_v13, 4  ;;  %v635_v47 = vrot.slane %v630_v3, 4  ;;  %v2338_v48 = vpop.permute.xlu0 %2337  ;;  %v3152_v49 = vperm.slane %v650_v6, %v2753_v31  ;;  %v3155_v55 = vperm.slane %v706_v21, %v2753_v31 }
  0xc5   : > { %v2340_v38 = vunpack.i.h.bf16 %v2338_v48  ;;  %v2339_v14 = vunpack.i.l.bf16 %v2338_v48  ;;  %v648_v61 = vsel %vm184_vm0, %v647_v7, %v622_v59  ;;  %v704_v62 = vsel %vm184_vm0, %v703_v53, %v678_v60 }
  0xc6   : > { %v2436_v63 = vpack.i.bf16 %v3155_v55, %v3152_v49  ;;  %v3162_v9 = vperm.slane %v648_v61, %v2753_v31  ;;  %v3165_v19 = vperm.slane %v704_v62, %v2753_v31  ;;  %v638_v1 = vsel %vm184_vm0, %v630_v3, %v637_v22 }
  0xc7   : > { %v1002_v0 = vsel %vm354_vm4, %v3033_v58, %v2340_v38  ;;  %v995_v57 = vsel %vm354_vm4, %v3092_v43, %v2339_v14  ;;  %v646_v59 = vperm.slane %v638_v1, %v2753_v31  ;;  %v694_v60 = vsel %vm184_vm0, %v686_v13, %v693_v18  ;;  %v2358_v18 = vpop.permute.xlu1 %2357 }
  0xc8   : > { %v996_v23 = vsel %vm356_vm5, %v995_v57, %v2344_v16  ;;  %v1003_v24 = vsel %vm356_vm5, %v1002_v0, %v2345_v12  ;;  %2437 = vrot.lane.b32.xlu0 %v2436_v63, %s2658_s23  ;;  %v2431_v30 = vpack.i.bf16 %v3165_v19, %v3162_v9  ;;  %v702_v22 = vperm.slane %v694_v60, %v2753_v31 }
  0xc9   : > { %v997_v58 = vsel %vm358_vm6, %v996_v23, %v2349_v11  ;;  %v1004_v43 = vsel %vm358_vm6, %v1003_v24, %v2350_v28  ;;  %v458_v16 = vsel %vm184_vm0, 0.0, %v457_v17  ;;  %v509_v11 = vrot.slane %v3149_v25, 4 }
  0xca   : > { %2432 = vrot.lane.b32.xlu1 %v2431_v30, %s2654_s19  ;;  %v2426_v12 = vpack.i.bf16 %v702_v22, %v646_v59  ;;  %v636_v8 = vsel %vm184_vm0, %v635_v47, %v3108_v15  ;;  %v692_v28 = vsel %vm184_vm0, %v691_v5, %v3085_v4  ;;  %v2360_v27 = vunpack.i.h.bf16 %v2358_v18 }
  0xcb   : > { %v2359_v37 = vunpack.i.l.bf16 %v2358_v18  ;;  %v661_v56 = vrot.slane %v646_v59, 4  ;;  %v717_v52 = vrot.slane %v702_v22, 4  ;;  %v3199_v13 = vperm.slane %v636_v8, %v2753_v31 }
  0xcc   : > { %2427 = vrot.lane.b32.xlu2 %v2426_v12, %s2655_s20  ;;  %v2353_v17 = vpop.permute.xlu0 %2352  ;;  %v2451_v53 = vpack.i.bf16 %v514_v32, %v458_v16  ;;  %v2446_v3 = vpack.i.bf16 %v512_v35, %v456_v34  ;;  %v3202_v15 = vperm.slane %v692_v28, %v2753_v31  ;;  %v454_v6 = vsel %vm184_vm0, 0.0, %v453_v2 }
  0xcd   : > { %v2355_v36 = vunpack.i.h.bf16 %v2353_v17  ;;  %v2354_v50 = vunpack.i.l.bf16 %v2353_v17  ;;  %v510_v21 = vsel %vm184_vm0, 0.0, %v509_v11  ;;  %v2380_v48 = vunpack.i.h.bf16 %v2378_v26 }
  0xce   : > { %v2379_v38 = vunpack.i.l.bf16 %v2378_v26  ;;  %v662_v14 = vsel %vm184_vm0, 0.0, %v661_v56  ;;  %v718_v61 = vsel %vm184_vm0, 0.0, %v717_v52  ;;  %v659_v62 = vrot.slane %v3199_v13, 4 }
  0xcf   : > { %v998_v4 = vsel %vm360_vm7, %v997_v58, %v2354_v50  ;;  %v1005_v7 = vsel %vm360_vm7, %v1004_v43, %v2355_v36  ;;  %v715_v63 = vrot.slane %v3202_v15, 4  ;;  %v2364_v1 = vunpack.i.l.bf16 %v3143_v44  ;;  %v2373_v60 = vpop.permute.xlu1 %2372 }
  0xd0   : > { %v999_v5 = vsel %vm362_vm8, %v998_v4, %v2359_v37  ;;  %v1006_v47 = vsel %vm362_vm8, %v1005_v7, %v2360_v27  ;;  %2452 = vrot.lane.b32.xlu0 %v2451_v53, %s2660_s25  ;;  %v2441_v0 = vpack.i.bf16 %v510_v21, %v454_v6  ;;  %v459_v57 = vrot.slane %v3073_v29, 4 }
  0xd1   : > { %v515_v59 = vrot.slane %v3076_v51, 4  ;;  %v2365_v23 = vunpack.i.h.bf16 %v3143_v44  ;;  %v1088_v24 = vrot.slane %v2380_v48, 4  ;;  %v1032_v30 = vrot.slane %v2379_v38, 4 }
  0xd2   : > { %2447 = vrot.lane.b32.xlu1 %v2446_v3, %s2656_s21  ;;  %v2466_v58 = vpack.i.bf16 %v718_v61, %v662_v14  ;;  %v660_v16 = vsel %vm184_vm0, 0.0, %v659_v62  ;;  %v716_v12 = vsel %vm184_vm0, 0.0, %v715_v63  ;;  %v460_v32 = vsel %vm184_vm0, 0.0, %v459_v57 }
  0xd3   : > { %v516_v29 = vsel %vm184_vm0, 0.0, %v515_v59  ;;  %v2375_v51 = vunpack.i.h.bf16 %v2373_v60  ;;  %v3226_v34 = vsel %vm364_vm9, %v999_v5, %v2364_v1  ;;  %v2374_v2 = vunpack.i.l.bf16 %v2373_v60 }
  0xd4   : > { %2442 = vrot.lane.b32.xlu2 %v2441_v0, %s2657_s22  ;;  %v2368_v22 = vpop.permute.xlu0 %2367  ;;  %v665_v11 = vrot.slane %v3152_v49, 4  ;;  %v2461_v8 = vpack.i.bf16 %v716_v12, %v660_v16  ;;  %v721_v28 = vrot.slane %v3155_v55, 4  ;;  %v663_v17 = vrot.slane %v3162_v9, 4 }
  0xd5   : > { %v2370_v43 = vunpack.i.h.bf16 %v2368_v22  ;;  %v2369_v18 = vunpack.i.l.bf16 %v2368_v22  ;;  %v719_v27 = vrot.slane %v3165_v19, 4  ;;  %v2456_v36 = vpack.i.bf16 %v516_v29, %v460_v32 }
  0xd6   : > { %v1102_v50 = vrot.slane %v2375_v51, 4  ;;  %v1046_v52 = vrot.slane %v2374_v2, 4  ;;  %v666_v53 = vsel %vm184_vm0, 0.0, %v665_v11  ;;  %v722_v9 = vsel %vm184_vm0, 0.0, %v721_v28 }
  0xd7   : > { %v1090_v44 = vrot.slane %v2370_v43, 4  ;;  %v1034_v35 = vrot.slane %v2369_v18, 4  ;;  %v1089_v26 = vsel %vm184_vm0, %v1088_v24, %v2370_v43  ;;  %v1033_v49 = vsel %vm184_vm0, %v1032_v30, %v2369_v18  ;;  %v3256_v30 = vpop.permute.xlu2 %2387 }
  0xd8   : > { %2467 = vrot.lane.b32.xlu0 %v2466_v58, %s2656_s21  ;;  %v664_v19 = vsel %vm184_vm0, 0.0, %v663_v17  ;;  %v720_v3 = vsel %vm184_vm0, 0.0, %v719_v27  ;;  %v3244_v4 = vsel %vm364_vm9, %v1006_v47, %v2365_v23  ;;  %v2476_v0 = vpack.i.bf16 %v722_v9, %v666_v53 }
  0xd9   : > { %v1091_v37 = vsel %vm184_vm0, %v2380_v48, %v1090_v44  ;;  %v1035_v56 = vsel %vm184_vm0, %v2379_v38, %v1034_v35  ;;  %v1095_v48 = vperm.slane %v1089_v26, %v2722_v10  ;;  %v1039_v38 = vperm.slane %v1033_v49, %v2722_v10 }
  0xda   : > { %2462 = vrot.lane.b32.xlu1 %v2461_v8, %s2657_s22  ;;  %v1099_v7 = vperm.slane %v1091_v37, %v2722_v10  ;;  %v1043_v6 = vperm.slane %v1035_v56, %v2722_v10  ;;  %v2471_v57 = vpack.i.bf16 %v720_v3, %v664_v19 }
  0xdb   : > { %v1114_v16 = vrot.slane %v1095_v48, 4  ;;  %v1058_v12 = vrot.slane %v1039_v38, 4 }
  0xdc   : > { %2457 = vrot.lane.b32.xlu2 %v2456_v36, %s2659_s24  ;;  %v2383_v55 = vpop.permute.xlu0 %2382  ;;  %v1126_v59 = vrot.slane %v1099_v7, 4  ;;  %v1070_v60 = vrot.slane %v1043_v6, 4 }
  0xdd   : > { %v2385_v21 = vunpack.i.h.bf16 %v2383_v55  ;;  %v2384_v5 = vunpack.i.l.bf16 %v2383_v55 }
  0xdf   : > { %v1100_v14 = vrot.slane %v2385_v21, 4  ;;  %v1103_v61 = vsel %vm184_vm0, %v2385_v21, %v1102_v50  ;;  %v1044_v62 = vrot.slane %v2384_v5, 4  ;;  %v1047_v63 = vsel %vm184_vm0, %v2384_v5, %v1046_v52 }
  0xe0   : > { %v1111_v1 = vperm.slane %v1103_v61, %v2722_v10  ;;  %v1055_v47 = vperm.slane %v1047_v63, %v2722_v10  ;;  %v2638_v61 = vld [vmem:[%s2697_s17 + $0x30] sm:$0xff] }
  0xe1   : > { %v1101_v23 = vsel %vm184_vm0, %v1100_v14, %v2375_v51  ;;  %v1045_v24 = vsel %vm184_vm0, %v1044_v62, %v2374_v2  ;;  %v3288_v14 = vpop.permute.xlu2 %1849  ;;  %v1431_v62 = vrot.slane %v2638_v61, 2 }
  0xe2   : > { %v1107_v22 = vperm.slane %v1101_v23, %v2722_v10  ;;  %v1124_v58 = vrot.slane %v1111_v1, 4  ;;  %v1051_v43 = vperm.slane %v1045_v24, %v2722_v10  ;;  %v1068_v18 = vrot.slane %v1055_v47, 4  ;;  %2477 = vrot.lane.b32.xlu1 %v2476_v0, %s2659_s24 }
  0xe3   : > { %v1071_v32 = vsel %vm184_vm0, %v1055_v47, %v1070_v60  ;;  %v1127_v29 = vsel %vm184_vm0, %v1111_v1, %v1126_v59  ;;  %v2639_v47 = vld [vmem:[%s2697_s17 + $0x38] sm:$0xff] }
  0xe4   : > { %v1112_v44 = vrot.slane %v1107_v22, 4  ;;  %v1056_v51 = vrot.slane %v1051_v43, 4  ;;  %2472 = vrot.lane.b32.xlu2 %v2471_v57, %s2660_s25  ;;  %v1079_v35 = vperm.slane %v1071_v32, %v2753_v31  ;;  %v1135_v2 = vperm.slane %v1127_v29, %v2753_v31 }
  0xe5   : > { %v1069_v11 = vsel %vm184_vm0, %v1068_v18, %v1043_v6  ;;  %v1125_v8 = vsel %vm184_vm0, %v1124_v58, %v1099_v7  ;;  %v1059_v28 = vsel %vm184_vm0, %v1051_v43, %v1058_v12  ;;  %v1115_v17 = vsel %vm184_vm0, %v1107_v22, %v1114_v16 }
  0xe6   : > { %v2491_v27 = vpack.i.bf16 %v1135_v2, %v1079_v35  ;;  %v1075_v37 = vperm.slane %v1069_v11, %v2753_v31  ;;  %v1131_v56 = vperm.slane %v1125_v8, %v2753_v31  ;;  %v1067_v36 = vperm.slane %v1059_v28, %v2753_v31  ;;  %v2398_v8 = vpop.permute.xlu1 %2397 }
  0xe7   : > { %v1123_v50 = vperm.slane %v1115_v17, %v2753_v31  ;;  %v1057_v26 = vsel %vm184_vm0, %v1056_v51, %v1039_v38  ;;  %v1113_v49 = vsel %vm184_vm0, %v1112_v44, %v1095_v48  ;;  %v1432_v0 = vrot.slane %v2639_v47, 2 }
  0xe8   : > { %2492 = vrot.lane.b32.xlu0 %v2491_v27, %s2658_s23  ;;  %v2486_v52 = vpack.i.bf16 %v1131_v56, %v1075_v37  ;;  %v1082_v53 = vrot.slane %v1067_v36, 4  ;;  %v3278_v55 = vperm.slane %v1057_v26, %v2753_v31  ;;  %v3281_v9 = vperm.slane %v1113_v49, %v2753_v31  ;;  %v2640_v27 = vld [vmem:[%s2697_s17] sm:$0xff] }
  0xe9   : > { %v2481_v19 = vpack.i.bf16 %v1123_v50, %v1067_v36  ;;  %v1138_v3 = vrot.slane %v1123_v50, 4  ;;  %v1084_v48 = vrot.slane %v1075_v37, 4  ;;  %v1140_v38 = vrot.slane %v1131_v56, 4  ;;  %v2408_v29 = vpop.permute.xlu2 %2407  ;;  %v2641_v56 = vld [vmem:[%s2697_s17 + $0x8] sm:$0xff]  ;;  %v2642_v50 = vld [vmem:[%s2697_s17 + $0x10] sm:$0x3] }
  0xea   : > { %2487 = vrot.lane.b32.xlu1 %v2486_v52, %s2654_s19  ;;  %v1080_v7 = vrot.slane %v3278_v55, 4  ;;  %v1136_v6 = vrot.slane %v3281_v9, 4  ;;  %v1083_v21 = vsel %vm184_vm0, 0.0, %v1082_v53  ;;  %v1434_v57 = vrot.slane %v2815_v33, 2 }
  0xeb   : > { %v1139_v5 = vsel %vm184_vm0, 0.0, %v1138_v3  ;;  %v1085_v60 = vsel %vm184_vm0, 0.0, %v1084_v48  ;;  %v1141_v23 = vsel %vm184_vm0, 0.0, %v1140_v38  ;;  %v3300_v22 = vsel %vm1420_vm2, %v1431_v62, %v1432_v0  ;;  %v2393_v3 = vpop.permute.xlu0 %2392 }
  0xec   : > { %2482 = vrot.lane.b32.xlu2 %v2481_v19, %s2655_s20  ;;  %v1081_v63 = vsel %vm184_vm0, 0.0, %v1080_v7  ;;  %v1137_v1 = vsel %vm184_vm0, 0.0, %v1136_v6  ;;  %v2501_v59 = vpack.i.bf16 %v1139_v5, %v1083_v21  ;;  %v3303_v58 = vsel %vm1420_vm2, %v1432_v0, %v1434_v57 }
  0xed   : > { %v2496_v24 = vpack.i.bf16 %v1137_v1, %v1081_v63  ;;  %v1086_v43 = vrot.slane %v1079_v35, 4  ;;  %v1142_v18 = vrot.slane %v1135_v2, 4  ;;  %v2511_v16 = vpack.i.bf16 %v1141_v23, %v1085_v60 }
  0xee   : > { %v2506_v33 = vpack.i.bf16 %v3303_v58, %v3300_v22  ;;  %v2410_v44 = vunpack.i.h.bf16 %v2408_v29  ;;  %v2409_v51 = vunpack.i.l.bf16 %v2408_v29  ;;  %v2400_v28 = vunpack.i.h.bf16 %v2398_v8  ;;  %v2403_v63 = vpop.permute.xlu1 %2402 }
  0xef   : > { %v1087_v12 = vsel %vm184_vm0, 0.0, %v1086_v43  ;;  %v1143_v32 = vsel %vm184_vm0, 0.0, %v1142_v18  ;;  %v2399_v17 = vunpack.i.l.bf16 %v2398_v8  ;;  %v1421_v37 = vrot.slane %v2640_v27, 2 }
  0xf0   : > { %2502 = vrot.lane.b32.xlu0 %v2501_v59, %s2656_s21  ;;  %v2516_v35 = vpack.i.bf16 %v1143_v32, %v1087_v12  ;;  %v1725_v2 = vrot.slane %v2410_v44, 4  ;;  %v1669_v11 = vrot.slane %v2409_v51, 4  ;;  %v1422_v36 = vrot.slane %v2641_v56, 2 }
  0xf1   : > { %v1424_v26 = vrot.slane %v2642_v50, 2  ;;  %v1723_v49 = vrot.slane %v2400_v28, 4  ;;  %v1667_v53 = vrot.slane %v2399_v17, 4  ;;  %v2395_v7 = vunpack.i.h.bf16 %v2393_v3 }
  0xf2   : > { %2497 = vrot.lane.b32.xlu1 %v2496_v24, %s2657_s22  ;;  %v3319_v52 = vsel %vm184_vm0, %v2400_v28, %v1725_v2  ;;  %v3322_v19 = vsel %vm184_vm0, %v2399_v17, %v1669_v11  ;;  %v2394_v6 = vunpack.i.l.bf16 %v2393_v3  ;;  %v3333_v48 = vsel %vm1420_vm2, %v1421_v37, %v1422_v36 }
  0xf3   : > { %v3327_v21 = vsel %vm184_vm0, %v1723_v49, %v2410_v44  ;;  %v3330_v5 = vsel %vm184_vm0, %v1667_v53, %v2409_v51  ;;  %v3336_v38 = vsel %vm1420_vm2, %v1422_v36, %v1424_v26  ;;  %v1308_v61 = vrot.slane %v2395_v7, 4 }
  0xf4   : > { %2512 = vrot.lane.b32.xlu2 %v2511_v16, %s2660_s25  ;;  %v1252_v62 = vrot.slane %v2394_v6, 4  ;;  %v2526_v1 = vpack.i.bf16 %v3336_v38, %v3333_v48  ;;  %v2405_v47 = vunpack.i.h.bf16 %v2403_v63  ;;  %v2404_v0 = vunpack.i.l.bf16 %v2403_v63  ;;  %v3363_v16 = vpop.permute.xlu0 %1851 }
  0xf6   : > { %v1306_v57 = vrot.slane %v2405_v47, 4  ;;  %v1250_v59 = vrot.slane %v2404_v0, 4  ;;  %v3345_v60 = vsel %vm184_vm0, %v2404_v0, %v1252_v62  ;;  %v3348_v23 = vsel %vm184_vm0, %v2405_v47, %v1308_v61 }
  0xf8   : > { %2507 = vrot.lane.b32.xlu0 %v2506_v33, %s2653_s18  ;;  %v3352_v24 = vsel %vm184_vm0, %v1250_v59, %v2394_v6 }
  0xfa   : > { %2517 = vrot.lane.b32.xlu1 %v2516_v35, %s2659_s24 }
  0xfc   : > { %1843 = vrot.lane.b32.xlu2 %v2984_v42, %s2661_s26 }
 0x100   : > { %1845 = vrot.lane.b32.xlu0 %v3300_v22, %s2661_s26 }
 0x102   : > { %1841 = vrot.lane.b32.xlu1 %v2980_v40, %s2661_s26 }
 0x104   : > { %2522 = vrot.lane.b32.xlu2 %v2946_v46, %s2661_s26  ;;  %v3355_v46 = vsel %vm184_vm0, %v1306_v57, %v2395_v7 }
 0x108   : > { %2527 = vrot.lane.b32.xlu0 %v2526_v1, %s2653_s18 }
 0x10a   : > { %1847 = vrot.lane.b32.xlu1 %v3303_v58, %s2661_s26 }
 0x10c   : > { %1839 = vrot.lane.b32.xlu2 %v3336_v38, %s2661_s26 }
 0x112   : > { %1837 = vrot.lane.b32.xlu1 %v3333_v48, %s2661_s26  ;;  %v2418_v43 = vpop.permute.xlu2 %2417 }
 0x113   : > { %v2419_v53 = vunpack.i.l.bf16 %v2418_v43 }
 0x126   : > { %v2428_v18 = vpop.permute.xlu2 %2427 }
 0x12c   : > { %v2423_v11 = vpop.permute.xlu1 %2422 }
 0x12d   : > { %v2425_v62 = vunpack.i.h.bf16 %v2423_v11  ;;  %v2424_v63 = vunpack.i.l.bf16 %v2423_v11 }
 0x12e   : > { %v2443_v33 = vpop.permute.xlu2 %2442 }
 0x12f   : > { %v2445_v12 = vunpack.i.h.bf16 %v2443_v33  ;;  %v2444_v32 = vunpack.i.l.bf16 %v2443_v33 }
 0x131   : > { %v580_v29 = vsel %vm352_vm3, %v3149_v25, %v2445_v12  ;;  %v573_v44 = vsel %vm352_vm3, %v3146_v20, %v2444_v32  ;;  %v2413_v51 = vpop.permute.xlu0 %2412  ;;  %v2420_v25 = vunpack.i.h.bf16 %v2418_v43 }
 0x132   : > { %v2415_v35 = vunpack.i.h.bf16 %v2413_v51  ;;  %v2414_v2 = vunpack.i.l.bf16 %v2413_v51 }
 0x134   : > { %v574_v8 = vsel %vm354_vm4, %v573_v44, %v2414_v2  ;;  %v581_v28 = vsel %vm354_vm4, %v580_v29, %v2415_v35 }
 0x136   : > { %v2458_v17 = vpop.permute.xlu2 %2457 }
 0x137   : > { %v2460_v0 = vunpack.i.h.bf16 %v2458_v17  ;;  %v2459_v57 = vunpack.i.l.bf16 %v2458_v17  ;;  %v2429_v17 = vunpack.i.l.bf16 %v2428_v18 }
 0x13a   : > { %v2438_v27 = vpop.permute.xlu0 %2437 }
 0x13c   : > { %v2433_v37 = vpop.permute.xlu1 %2432 }
 0x13e   : > { %v2473_v56 = vpop.permute.xlu2 %2472 }
 0x142   : > { %v2453_v36 = vpop.permute.xlu0 %2452 }
 0x143   : > { %v2455_v20 = vunpack.i.h.bf16 %v2453_v36  ;;  %v2454_v7 = vunpack.i.l.bf16 %v2453_v36 }
 0x144   : > { %v2448_v50 = vpop.permute.xlu1 %2447 }
 0x145   : > { %v2450_v26 = vunpack.i.h.bf16 %v2448_v50  ;;  %v2449_v49 = vunpack.i.l.bf16 %v2448_v50 }
 0x146   : > { %v3371_v3 = vpop.permute.xlu2 %2482 }
 0x147   : > { %v575_v6 = vsel %vm356_vm5, %v574_v8, %v2449_v49  ;;  %v582_v61 = vsel %vm356_vm5, %v581_v28, %v2450_v26  ;;  %v2430_v28 = vunpack.i.h.bf16 %v2428_v18  ;;  %v2434_v18 = vunpack.i.l.bf16 %v2433_v37 }
 0x148   : > { %v576_v1 = vsel %vm358_vm6, %v575_v6, %v2419_v53  ;;  %v583_v47 = vsel %vm358_vm6, %v582_v61, %v2420_v25 }
 0x149   : > { %v577_v59 = vsel %vm360_vm7, %v576_v1, %v2454_v7  ;;  %v584_v43 = vsel %vm360_vm7, %v583_v47, %v2455_v20  ;;  %v2435_v7 = vunpack.i.h.bf16 %v2433_v37  ;;  %v2440_v1 = vunpack.i.h.bf16 %v2438_v27 }
 0x14a   : > { %v578_v33 = vsel %vm362_vm8, %v577_v59, %v2424_v63  ;;  %v585_v12 = vsel %vm362_vm8, %v584_v43, %v2425_v62  ;;  %v2468_v44 = vpop.permute.xlu0 %2467  ;;  %v2474_v62 = vunpack.i.l.bf16 %v2473_v56  ;;  %v2439_v47 = vunpack.i.l.bf16 %v2438_v27 }
 0x14b   : > { %v579_v32 = vsel %vm364_vm9, %v578_v33, %v2459_v57  ;;  %v586_v29 = vsel %vm364_vm9, %v585_v12, %v2460_v0  ;;  %v2470_v49 = vunpack.i.h.bf16 %v2468_v44  ;;  %v2469_v25 = vunpack.i.l.bf16 %v2468_v44 }
 0x14c   : > { %v2463_v51 = vpop.permute.xlu1 %2462  ;;  %v2045_v35 = vrot.slane %v579_v32, 4  ;;  %v2046_v2 = vrot.slane %v586_v29, 4  ;;  %v2051_v32 = vrot.slane %v3226_v34, 4  ;;  %v2052_v27 = vrot.slane %v3244_v4, 4 }
 0x14d   : > { %v2465_v11 = vunpack.i.h.bf16 %v2463_v51  ;;  %v2464_v8 = vunpack.i.l.bf16 %v2463_v51  ;;  %v1517_v34 = vrot.slane %v2967_v45, 4 }
 0x14e   : > { %v3383_v36 = vpop.permute.xlu2 %2512  ;;  %v3387_v50 = vsel %vm2067_vm10, %v3017_v39, %v2045_v35  ;;  %v3391_v26 = vsel %vm2067_vm10, %v3020_v54, %v2046_v2  ;;  %v2475_v39 = vunpack.i.h.bf16 %v2473_v56  ;;  %v1461_v2 = vrot.slane %v2964_v41, 4 }
 0x14f   : > { %4055 = vst [vmem:[#allocation2_spill] sm:$0xff] %v3387_v50  ;;  %v786_v53 = vsel %vm352_vm3, %v3202_v15, %v2465_v11  ;;  %v779_v20 = vsel %vm352_vm3, %v3199_v13, %v2464_v8  ;;  %v2390_v11 = vunpack.i.h.bf16 %v3256_v30  ;;  %v2389_v8 = vunpack.i.l.bf16 %v3256_v30 }
 0x150   : > { %4056 = vst [vmem:[#allocation3_spill] sm:$0xff] %v3391_v26  ;;  %v787_v6 = vsel %vm354_vm4, %v786_v53, %v2430_v28  ;;  %v780_v61 = vsel %vm354_vm4, %v779_v20, %v2429_v17  ;;  %v1462_v17 = vsel %vm184_vm0, %v1461_v2, %v2980_v40  ;;  %v3431_v53 = vperm.slane %v3345_v60, %v2722_v10 }
 0x151   : > { %v788_v63 = vsel %vm356_vm5, %v787_v6, %v2470_v49  ;;  %v781_v54 = vsel %vm356_vm5, %v780_v61, %v2469_v25  ;;  %v1296_v49 = vrot.slane %v2390_v11, 4  ;;  %v1240_v25 = vrot.slane %v2389_v8, 4 }
 0x152   : > { %v782_v0 = vsel %vm358_vm6, %v781_v54, %v2434_v18  ;;  %v789_v15 = vsel %vm358_vm6, %v788_v63, %v2435_v7  ;;  %v3435_v20 = vperm.slane %v3348_v23, %v2722_v10  ;;  %v1257_v7 = vperm.slane %v3352_v24, %v2722_v10 }
 0x153   : > { %v783_v13 = vsel %vm360_vm7, %v782_v0, %v2474_v62  ;;  %v790_v37 = vsel %vm360_vm7, %v789_v15, %v2475_v39  ;;  %v1313_v18 = vperm.slane %v3355_v46, %v2722_v10  ;;  %v3442_v39 = vperm.slane %v1462_v17, %v2722_v10 }
 0x154   : > { %v2478_v57 = vpop.permute.xlu1 %2477  ;;  %v784_v59 = vsel %vm362_vm8, %v783_v13, %v2439_v47  ;;  %v791_v43 = vsel %vm362_vm8, %v790_v37, %v2440_v1  ;;  %v1518_v60 = vsel %vm184_vm0, %v1517_v34, %v2984_v42  ;;  %v1505_v62 = vrot.slane %v3303_v58, 4 }
 0x155   : > { %v2480_v56 = vunpack.i.h.bf16 %v2478_v57  ;;  %v2479_v33 = vunpack.i.l.bf16 %v2478_v57  ;;  %v1449_v23 = vrot.slane %v3300_v22, 4  ;;  %v1274_v46 = vrot.slane %v3431_v53, 4 }
 0x156   : > { %v3407_v12 = vpop.permute.xlu2 %1843  ;;  %v1330_v47 = vrot.slane %v3435_v20, 4  ;;  %v1262_v37 = vrot.slane %v1257_v7, 4  ;;  %v1318_v57 = vrot.slane %v1313_v18, 4 }
 0x157   : > { %v785_v29 = vsel %vm364_vm9, %v784_v59, %v2479_v33  ;;  %v792_v44 = vsel %vm364_vm9, %v791_v43, %v2480_v56  ;;  %v2485_v56 = vunpack.i.h.bf16 %v3371_v3  ;;  %v2484_v33 = vunpack.i.l.bf16 %v3371_v3 }
 0x158   : > { %v3414_v51 = vsel %vm2067_vm10, %v785_v29, %v2051_v32  ;;  %v3417_v35 = vsel %vm2067_vm10, %v792_v44, %v2052_v27 }
 0x159   : > { %4057 = vst [vmem:[#allocation4_spill] sm:$0xff] %v3414_v51 }
 0x15a   : > { %4058 = vst [vmem:[#allocation5_spill] sm:$0xff] %v3417_v35  ;;  %v3422_v28 = vpop.permute.xlu0 %2492 }
 0x15c   : > { %v3425_v4 = vpop.permute.xlu1 %2487 }
 0x15e   : > { %v2523_v30 = vpop.permute.xlu2 %2522 }
 0x15f   : > { %v2525_v6 = vunpack.i.h.bf16 %v2523_v30  ;;  %v2524_v61 = vunpack.i.l.bf16 %v2523_v30 }
 0x161   : > { %v1294_v63 = vrot.slane %v2525_v6, 4  ;;  %v1297_v54 = vsel %vm184_vm0, %v2525_v6, %v1296_v49  ;;  %v1238_v1 = vrot.slane %v2524_v61, 4  ;;  %v1241_v24 = vsel %vm184_vm0, %v2524_v61, %v1240_v25 }
 0x162   : > { %v1305_v0 = vperm.slane %v1297_v54, %v2722_v10  ;;  %v1249_v15 = vperm.slane %v1241_v24, %v2722_v10  ;;  %v2503_v13 = vpop.permute.xlu0 %2502 }
 0x163   : > { %v1295_v59 = vsel %vm184_vm0, %v1294_v63, %v2390_v11  ;;  %v1239_v43 = vsel %vm184_vm0, %v1238_v1, %v2389_v8  ;;  %v2505_v3 = vunpack.i.h.bf16 %v2503_v13  ;;  %v2504_v30 = vunpack.i.l.bf16 %v2503_v13 }
 0x164   : > { %v1301_v32 = vperm.slane %v1295_v59, %v2722_v10  ;;  %v1245_v27 = vperm.slane %v1239_v43, %v2722_v10  ;;  %v2498_v29 = vpop.permute.xlu1 %2497  ;;  %v1275_v34 = vsel %vm184_vm0, %v1274_v46, %v1249_v15  ;;  %v1331_v17 = vsel %vm184_vm0, %v1330_v47, %v1305_v0 }
 0x165   : > { %v2500_v44 = vunpack.i.h.bf16 %v2498_v29  ;;  %v2499_v2 = vunpack.i.l.bf16 %v2498_v29  ;;  %v1450_v63 = vsel %vm184_vm0, %v1449_v23, %v3333_v48  ;;  %v3478_v46 = vperm.slane %v1518_v60, %v2722_v10 }
 0x166   : > { %v1320_v49 = vrot.slane %v1301_v32, 4  ;;  %v1264_v25 = vrot.slane %v1245_v27, 4  ;;  %v3463_v11 = vsel %vm184_vm0, %v1262_v37, %v1245_v27  ;;  %v3466_v8 = vsel %vm184_vm0, %v1318_v57, %v1301_v32 }
 0x167   : > { %v1207_v6 = vsel %vm352_vm3, %v3281_v9, %v2500_v44  ;;  %v1200_v61 = vsel %vm352_vm3, %v3278_v55, %v2499_v2  ;;  %v1506_v55 = vsel %vm184_vm0, %v1505_v62, %v3336_v38  ;;  %v3491_v57 = vperm.slane %v1275_v34, %v2753_v31 }
 0x168   : > { %v1201_v54 = vsel %vm354_vm4, %v1200_v61, %v2484_v33  ;;  %v1208_v1 = vsel %vm354_vm4, %v1207_v6, %v2485_v56  ;;  %v1265_v24 = vsel %vm184_vm0, %v1257_v7, %v1264_v25  ;;  %v1321_v37 = vsel %vm184_vm0, %v1313_v18, %v1320_v49 }
 0x169   : > { %v1202_v47 = vsel %vm356_vm5, %v1201_v54, %v2504_v30  ;;  %v1209_v13 = vsel %vm356_vm5, %v1208_v1, %v2505_v3  ;;  %v3483_v9 = vperm.slane %v1265_v24, %v2753_v31  ;;  %v3494_v7 = vperm.slane %v1331_v17, %v2753_v31 }
 0x16a   : > { %v3487_v23 = vpop.permute.xlu0 %2507  ;;  %v3497_v60 = vperm.slane %v1450_v63, %v2722_v10  ;;  %v1332_v59 = vrot.slane %v1305_v0, 4  ;;  %v1276_v43 = vrot.slane %v1249_v15, 4  ;;  %v3500_v56 = vperm.slane %v1321_v37, %v2753_v31 }
 0x16b   : > { %v1929_v62 = vrot.slane %v3363_v16, 4  ;;  %v1288_v32 = vrot.slane %v3483_v9, 4  ;;  %v1290_v27 = vrot.slane %v3491_v57, 4  ;;  %v2514_v29 = vunpack.i.l.bf16 %v3383_v36 }
 0x16c   : > { %v2518_v33 = vpop.permute.xlu1 %2517  ;;  %v2494_v44 = vunpack.i.l.bf16 %v3422_v28  ;;  %v2490_v0 = vunpack.i.h.bf16 %v3425_v4  ;;  %v2489_v15 = vunpack.i.l.bf16 %v3425_v4  ;;  %v1344_v49 = vrot.slane %v3500_v56, 4 }
 0x16d   : > { %v2519_v2 = vunpack.i.l.bf16 %v2518_v33  ;;  %v3514_v17 = vsel %vm184_vm0, 0.0, %v1288_v32  ;;  %v3518_v25 = vsel %vm184_vm0, 0.0, %v1290_v27  ;;  %v1346_v3 = vrot.slane %v3494_v7, 4 }
 0x16e   : > { %v1277_v30 = vsel %vm184_vm0, %v3431_v53, %v1276_v43  ;;  %v1333_v4 = vsel %vm184_vm0, %v3435_v20, %v1332_v59  ;;  %v3526_v6 = vsel %vm184_vm0, 0.0, %v1344_v49  ;;  %v1203_v54 = vsel %vm358_vm6, %v1202_v47, %v2489_v15 }
 0x16f   : > { %v3529_v61 = vperm.slane %v1277_v30, %v2753_v31  ;;  %v3532_v63 = vperm.slane %v1333_v4, %v2753_v31  ;;  %v3538_v24 = vsel %vm184_vm0, 0.0, %v1346_v3  ;;  %v1204_v53 = vsel %vm360_vm7, %v1203_v54, %v2514_v29 }
 0x170   : > { %v1210_v20 = vsel %vm358_vm6, %v1209_v13, %v2490_v0  ;;  %v2515_v37 = vunpack.i.h.bf16 %v3383_v36  ;;  %v1473_v43 = vrot.slane %v3442_v39, 4  ;;  %v2495_v27 = vunpack.i.h.bf16 %v3422_v28 }
 0x171   : > { %v1292_v15 = vrot.slane %v3529_v61, 4  ;;  %v1348_v29 = vrot.slane %v3532_v63, 4  ;;  %v1205_v13 = vsel %vm362_vm8, %v1204_v53, %v2494_v44  ;;  %v2520_v0 = vunpack.i.h.bf16 %v2518_v33 }
 0x172   : > { %v3543_v59 = vpop.permute.xlu0 %1845  ;;  %v1474_v49 = vsel %vm184_vm0, %v1473_v43, %v3497_v60  ;;  %v3559_v3 = vsel %vm364_vm9, %v1205_v13, %v2519_v2  ;;  %v1211_v30 = vsel %vm360_vm7, %v1210_v20, %v2515_v37  ;;  %v1930_v28 = vsel %vm184_vm0, %v1929_v62, %v3407_v12 }
 0x173   : > { %4059 = vst [vmem:[#allocation6_spill] sm:$0xff] %v3559_v3  ;;  %v2510_v4 = vunpack.i.h.bf16 %v3487_v23  ;;  %v3566_v54 = vsel %vm184_vm0, 0.0, %v1292_v15  ;;  %v3569_v33 = vsel %vm184_vm0, 0.0, %v1348_v29  ;;  %v1212_v44 = vsel %vm362_vm8, %v1211_v30, %v2495_v27 }
 0x174   : > { %v3554_v36 = vpop.permute.xlu1 %1841  ;;  %4060 = vst [vmem:[#allocation7_spill] sm:$0xff] %v3566_v54  ;;  %v3573_v53 = vperm.slane %v1506_v55, %v2722_v10  ;;  %v2509_v2 = vunpack.i.l.bf16 %v3487_v23  ;;  %v1529_v20 = vrot.slane %v3478_v46, 4  ;;  %v1730_v37 = vperm.slane %v3327_v21, %v2722_v10 }
 0x175   : > { %4061 = vst [vmem:[#allocation8_spill] sm:$0xff] %v3569_v33  ;;  %v1674_v43 = vperm.slane %v3330_v5, %v2722_v10  ;;  %v3584_v15 = vperm.slane %v1930_v28, %v2722_v10  ;;  %v3587_v27 = vsel %vm364_vm9, %v1212_v44, %v2520_v0  ;;  %v1873_v55 = vrot.slane %v3288_v14, 4 }
 0x176   : > { %4062 = vst [vmem:[#allocation9_spill] sm:$0xff] %v3587_v27  ;;  %v3592_v23 = vperm.slane %v3319_v52, %v2722_v10  ;;  %v1711_v29 = vrot.slane %v2510_v4, 4  ;;  %v3596_v21 = vperm.slane %v3463_v11, %v2753_v31  ;;  %v3600_v5 = vperm.slane %v3466_v8, %v2753_v31  ;;  %v3627_v27 = vpop.permute.xlu2 %1839 }
 0x177   : > { %v1655_v30 = vrot.slane %v2509_v2, 4  ;;  %v1530_v44 = vsel %vm184_vm0, %v1529_v20, %v3573_v53  ;;  %v1735_v62 = vrot.slane %v1730_v37, 4  ;;  %v3606_v52 = vperm.slane %v3322_v19, %v2722_v10 }
 0x178   : > { %4063 = vst [vmem:[#allocation10_spill] sm:$0xff] %v3596_v21  ;;  %v1679_v47 = vrot.slane %v1674_v43, 4  ;;  %v1941_v32 = vrot.slane %v3584_v15, 4  ;;  %v1874_v8 = vsel %vm184_vm0, %v1873_v55, %v3554_v36  ;;  %v3616_v1 = vperm.slane %v1474_v49, %v2753_v31 }
 0x179   : > { %4064 = vst [vmem:[#allocation11_spill] sm:$0xff] %v3600_v5  ;;  %v3622_v26 = vperm.slane %v1530_v44, %v2753_v31  ;;  %v1861_v50 = vrot.slane %v3543_v59, 4  ;;  %v1286_v55 = vrot.slane %v3596_v21, 4 }
 0x17a   : > { %v2528_v13 = vpop.permute.xlu0 %2527 }
 0x17b   : > { %v2530_v28 = vunpack.i.h.bf16 %v2528_v13  ;;  %v2529_v0 = vunpack.i.l.bf16 %v2528_v13  ;;  %v1553_v54 = vrot.slane %v3622_v26, 4 }
 0x17c   : > { %v3609_v11 = vpop.permute.xlu1 %1847 }
 0x17d   : > { %v1656_v18 = vsel %vm184_vm0, %v1655_v30, %v2529_v0  ;;  %v1712_v13 = vsel %vm184_vm0, %v1711_v29, %v2530_v28  ;;  %v1917_v34 = vrot.slane %v3609_v11, 4  ;;  %v1713_v35 = vrot.slane %v2530_v28, 4 }
 0x17e   : > { %v1662_v20 = vperm.slane %v1656_v18, %v2722_v10  ;;  %v1718_v19 = vperm.slane %v1712_v13, %v2722_v10  ;;  %v1342_v30 = vrot.slane %v3600_v5, 4  ;;  %v1657_v29 = vrot.slane %v2529_v0, 4 }
 0x17f   : > { %v1475_v18 = vrot.slane %v3497_v60, 4  ;;  %v3631_v13 = vperm.slane %v1874_v8, %v2722_v10  ;;  %v1918_v44 = vsel %vm184_vm0, %v1917_v34, %v3627_v27  ;;  %v1497_v5 = vrot.slane %v3616_v1, 4 }
 0x180   : > { %v1681_v51 = vrot.slane %v1662_v20, 4  ;;  %v1737_v49 = vrot.slane %v1718_v19, 4  ;;  %v1680_v3 = vsel %vm184_vm0, %v1679_v47, %v1662_v20  ;;  %v1736_v28 = vsel %vm184_vm0, %v1735_v62, %v1718_v19 }
 0x181   : > { %v3638_v21 = vperm.slane %v1918_v44, %v2722_v10  ;;  %v3646_v33 = vperm.slane %v1680_v3, %v2753_v31  ;;  %v3649_v34 = vperm.slane %v1736_v28, %v2753_v31  ;;  %v1658_v47 = vsel %vm184_vm0, %v2509_v2, %v1657_v29 }
 0x182   : > { %v1682_v0 = vsel %vm184_vm0, %v1674_v43, %v1681_v51  ;;  %v1738_v8 = vsel %vm184_vm0, %v1730_v37, %v1737_v49  ;;  %v1714_v62 = vsel %vm184_vm0, %v2510_v4, %v1713_v35  ;;  %v1476_v43 = vsel %vm184_vm0, %v3442_v39, %v1475_v18 }
 0x183   : > { %v1690_v60 = vperm.slane %v1682_v0, %v2753_v31  ;;  %v1746_v51 = vperm.slane %v1738_v8, %v2753_v31  ;;  %v1703_v3 = vrot.slane %v3646_v33, 4  ;;  %v1759_v19 = vrot.slane %v3649_v34, 4 }
 0x184   : > { %v3653_v20 = vpop.permute.xlu1 %1837  ;;  %v1942_v49 = vsel %vm184_vm0, %v1941_v32, %v3638_v21  ;;  %v1885_v2 = vrot.slane %v3631_v13, 4  ;;  %v1666_v44 = vperm.slane %v1658_v47, %v2722_v10  ;;  %v1722_v28 = vperm.slane %v1714_v62, %v2722_v10 }
 0x185   : > { %v1862_v37 = vsel %vm184_vm0, %v1861_v50, %v3653_v20  ;;  %v2536_v4 = vpack.i.bf16 %v1746_v51, %v1690_v60  ;;  %v1705_v29 = vrot.slane %v1690_v60, 4  ;;  %v1704_v39 = vsel %vm184_vm0, 0.0, %v1703_v3 }
 0x186   : > { %v1868_v35 = vperm.slane %v1862_v37, %v2722_v10  ;;  %v1760_v18 = vsel %vm184_vm0, 0.0, %v1759_v19  ;;  %v1761_v50 = vrot.slane %v1746_v51, 4  ;;  %v3673_v8 = vperm.slane %v1942_v49, %v2753_v31 }
 0x187   : > { %2537 = vrot.lane.b32.xlu1 %v2536_v4, %s2655_s20  ;;  %v2531_v0 = vpack.i.bf16 %v1760_v18, %v1704_v39  ;;  %v1463_v37 = vrot.slane %v2980_v40, 4  ;;  %v3680_v47 = vsel %vm184_vm0, 0.0, %v1705_v29  ;;  %v1747_v62 = vrot.slane %v3592_v23, 4 }
 0x188   : > { %v1886_v32 = vsel %vm184_vm0, %v1885_v2, %v1868_v35  ;;  %v3683_v51 = vsel %vm184_vm0, 0.0, %v1761_v50  ;;  %v1691_v3 = vrot.slane %v3606_v52, 4  ;;  %v1287_v19 = vsel %vm184_vm0, 0.0, %v1286_v55 }
 0x189   : > { %v3677_v60 = vperm.slane %v1886_v32, %v2753_v31  ;;  %2532 = vrot.lane.b32.xlu0 %v2531_v0, %s2657_s22  ;;  %v2551_v40 = vpack.i.bf16 %v3683_v51, %v3680_v47  ;;  %v1343_v2 = vsel %vm184_vm0, 0.0, %v1342_v30  ;;  %v1498_v4 = vsel %vm184_vm0, 0.0, %v1497_v5 }
 0x18a   : > { %v1554_v29 = vsel %vm184_vm0, 0.0, %v1553_v54  ;;  %v1965_v39 = vrot.slane %v3673_v8, 4  ;;  %v1531_v18 = vrot.slane %v3573_v53, 4  ;;  %v1692_v50 = vsel %vm184_vm0, %v1691_v3, %v1666_v44 }
 0x18b   : > { %v1909_v49 = vrot.slane %v3677_v60, 4  ;;  %v1748_v0 = vsel %vm184_vm0, %v1747_v62, %v1722_v28  ;;  %v1484_v32 = vperm.slane %v1476_v43, %v2753_v31  ;;  %v3702_v47 = vperm.slane %v1692_v50, %v2753_v31 }
 0x18c   : > { %v3705_v30 = vperm.slane %v1748_v0, %v2753_v31  ;;  %v1693_v5 = vrot.slane %v1666_v44, 4  ;;  %v1887_v54 = vrot.slane %v1868_v35, 4  ;;  %v2541_v51 = vpack.i.bf16 %v1343_v2, %v1287_v19 }
 0x18d   : > { %v1910_v55 = vsel %vm184_vm0, 0.0, %v1909_v49  ;;  %v1532_v53 = vsel %vm184_vm0, %v3478_v46, %v1531_v18  ;;  %v1749_v3 = vrot.slane %v1722_v28, 4  ;;  %v1707_v49 = vrot.slane %v3702_v47, 4 }
 0x18e   : > { %1974 = vrot.lane.b32.xlu2 %v1910_v55, %s2657_s22  ;;  %v1540_v62 = vperm.slane %v1532_v53, %v2753_v31  ;;  %v2566_v43 = vpack.i.bf16 %v3705_v30, %v3702_v47  ;;  %v1464_v50 = vsel %vm184_vm0, %v2964_v41, %v1463_v37  ;;  %v2546_v35 = vpack.i.bf16 %v1554_v29, %v1498_v4 }
 0x18f   : > { %2542 = vrot.lane.b32.xlu1 %v2541_v51, %s2657_s22  ;;  %v1763_v44 = vrot.slane %v3705_v30, 4  ;;  %v1499_v19 = vrot.slane %v1484_v32, 4  ;;  %v1966_v2 = vsel %vm184_vm0, 0.0, %v1965_v39  ;;  %v3720_v28 = vsel %vm184_vm0, 0.0, %v1707_v49 }
 0x190   : > { %v2561_v46 = vpack.i.bf16 %v1540_v62, %v1484_v32  ;;  %v1555_v18 = vrot.slane %v1540_v62, 4  ;;  %v1888_v0 = vsel %vm184_vm0, %v3631_v13, %v1887_v54  ;;  %v1694_v4 = vsel %vm184_vm0, %v3606_v52, %v1693_v5 }
 0x191   : > { %2002 = vrot.lane.b32.xlu0 %v1966_v2, %s2657_s22  ;;  %v3726_v41 = vsel %vm184_vm0, 0.0, %v1763_v44  ;;  %v3729_v37 = vsel %vm184_vm0, 0.0, %v1499_v19  ;;  %v3739_v55 = vperm.slane %v1694_v4, %v2753_v31  ;;  %v1750_v13 = vsel %vm184_vm0, %v3592_v23, %v1749_v3 }
 0x192   : > { %v2581_v29 = vpack.i.bf16 %v3726_v41, %v3720_v28  ;;  %v3736_v39 = vsel %vm184_vm0, 0.0, %v1555_v18  ;;  %v3744_v32 = vperm.slane %v1464_v50, %v2722_v10  ;;  %v3749_v52 = vperm.slane %v1750_v13, %v2753_v31 }
 0x193   : > { %v2576_v47 = vpack.i.bf16 %v3736_v39, %v3729_v37  ;;  %v1519_v30 = vrot.slane %v2984_v42, 4  ;;  %v1451_v5 = vrot.slane %v3333_v48, 4  ;;  %v1943_v54 = vrot.slane %v3638_v21, 4 }
 0x194   : > { %v1709_v51 = vrot.slane %v3739_v55, 4  ;;  %v1507_v53 = vrot.slane %v3336_v38, 4  ;;  %v1896_v23 = vperm.slane %v1888_v0, %v2753_v31  ;;  %v2596_v3 = vpack.i.bf16 %v3749_v52, %v3739_v55 }
 0x195   : > { %v1765_v62 = vrot.slane %v3749_v52, 4  ;;  %v1485_v48 = vrot.slane %v3744_v32, 4  ;;  %v1944_v38 = vsel %vm184_vm0, %v3584_v15, %v1943_v54  ;;  %v1452_v50 = vsel %vm184_vm0, %v3300_v22, %v1451_v5 }
 0x196   : > { %2547 = vrot.lane.b32.xlu2 %v2546_v35, %s2657_s22  ;;  %v3762_v49 = vsel %vm184_vm0, 0.0, %v1709_v51  ;;  %v1508_v35 = vsel %vm184_vm0, %v3303_v58, %v1507_v53  ;;  %v1520_v44 = vsel %vm184_vm0, %v2967_v45, %v1519_v30  ;;  %v1460_v19 = vperm.slane %v1452_v50, %v2722_v10 }
 0x197   : > { %1978 = vrot.lane.b32.xlu1 %v1896_v23, %s2655_s20  ;;  %v3766_v42 = vsel %vm184_vm0, 0.0, %v1765_v62  ;;  %v1516_v2 = vperm.slane %v1508_v35, %v2722_v10  ;;  %v1528_v15 = vperm.slane %v1520_v44, %v2722_v10  ;;  %v1952_v18 = vperm.slane %v1944_v38, %v2753_v31 }
 0x198   : > { %v2611_v21 = vpack.i.bf16 %v3766_v42, %v3762_v49  ;;  %v1486_v0 = vsel %vm184_vm0, %v1485_v48, %v1460_v19  ;;  %v4065_v4 = vpack.i.bf16 %v3500_v56, %v3483_v9  ;;  %v1875_v5 = vrot.slane %v3554_v36, 4 }
 0x199   : > { %2552 = vrot.lane.b32.xlu0 %v2551_v40, %s2656_s21  ;;  %v1541_v40 = vrot.slane %v1528_v15, 4  ;;  %v1492_v22 = vperm.slane %v1486_v0, %v2753_v31  ;;  %v1967_v30 = vrot.slane %v1952_v18, 4  ;;  %v1911_v54 = vrot.slane %v1896_v23, 4 }
 0x19a   : > { %v1863_v51 = vrot.slane %v3653_v20, 4  ;;  %v1931_v48 = vrot.slane %v3407_v12, 4  ;;  %v1876_v38 = vsel %vm184_vm0, %v3288_v14, %v1875_v5  ;;  %v4066_v44 = vpack.i.bf16 %v3526_v6, %v3514_v17 }
 0x19b   : > { %v1542_v58 = vsel %vm184_vm0, %v1541_v40, %v1516_v2  ;;  %v1501_v53 = vrot.slane %v1492_v22, 4  ;;  %v1912_v36 = vsel %vm184_vm0, 0.0, %v1911_v54  ;;  %v1884_v12 = vperm.slane %v1876_v38, %v2722_v10 }
 0x19c   : > { %v1548_v45 = vperm.slane %v1542_v58, %v2753_v31  ;;  %v1864_v23 = vsel %vm184_vm0, %v3543_v59, %v1863_v51  ;;  %v1932_v14 = vsel %vm184_vm0, %v3363_v16, %v1931_v48  ;;  %v4067_v28 = vpack.i.bf16 %v3494_v7, %v3491_v57 }
 0x19d   : > { %v1502_v9 = vsel %vm184_vm0, 0.0, %v1501_v53  ;;  %v1872_v50 = vperm.slane %v1864_v23, %v2722_v10  ;;  %v1897_v59 = vrot.slane %v1884_v12, 4  ;;  %v1487_v41 = vrot.slane %v1460_v19, 4 }
 0x19e   : > { %2006 = vrot.lane.b32.xlu2 %v1952_v18, %s2655_s20  ;;  %v2591_v13 = vpack.i.bf16 %v1548_v45, %v1492_v22  ;;  %v1557_v62 = vrot.slane %v1548_v45, 4 }
 0x19f   : > { %2562 = vrot.lane.b32.xlu1 %v2561_v46, %s2655_s20  ;;  %v1968_v46 = vsel %vm184_vm0, 0.0, %v1967_v30  ;;  %v1898_v18 = vsel %vm184_vm0, %v1897_v59, %v1872_v50  ;;  %v1488_v37 = vsel %vm184_vm0, %v3744_v32, %v1487_v41  ;;  %v4068_v30 = vpack.i.bf16 %v3538_v24, %v3518_v25 }
 0x1a0   : > { %v1558_v56 = vsel %vm184_vm0, 0.0, %v1557_v62  ;;  %v1904_v17 = vperm.slane %v1898_v18, %v2753_v31  ;;  %v1496_v0 = vperm.slane %v1488_v37, %v2753_v31  ;;  %v4069_v25 = vpack.i.bf16 %v3532_v63, %v3529_v61 }
 0x1a1   : > { %2557 = vrot.lane.b32.xlu0 %v4065_v4, %s2655_s20  ;;  %v2606_v20 = vpack.i.bf16 %v1558_v56, %v1502_v9 }
 0x1a2   : > { %v1503_v57 = vrot.slane %v1496_v0, 4 }
 0x1a6   : > { %2567 = vrot.lane.b32.xlu2 %v2566_v43, %s2654_s19  ;;  %v1919_v43 = vrot.slane %v3627_v27, 4  ;;  %v1940_v27 = vperm.slane %v1932_v14, %v2722_v10 }
 0x1a7   : > { %2010 = vrot.lane.b32.xlu1 %v1968_v46, %s2656_s21 }
 0x1a8   : > { %v1920_v35 = vsel %vm184_vm0, %v3609_v11, %v1919_v43  ;;  %v1953_v11 = vrot.slane %v1940_v27, 4 }
 0x1a9   : > { %1982 = vrot.lane.b32.xlu0 %v1912_v36, %s2656_s21  ;;  %v1928_v16 = vperm.slane %v1920_v35, %v2722_v10 }
 0x1ab   : > { %v1954_v6 = vsel %vm184_vm0, %v1953_v11, %v1928_v16  ;;  %v1955_v4 = vrot.slane %v1928_v16, 4 }
 0x1ac   : > { %v1960_v10 = vperm.slane %v1954_v6, %v2753_v31 }
 0x1ad   : > { %v1956_v5 = vsel %vm184_vm0, %v1940_v27, %v1955_v4 }
 0x1ae   : > { %2572 = vrot.lane.b32.xlu2 %v4066_v44, %s2656_s21  ;;  %v1969_v58 = vrot.slane %v1960_v10, 4  ;;  %v1964_v55 = vperm.slane %v1956_v5, %v2753_v31 }
 0x1af   : > { %2582 = vrot.lane.b32.xlu1 %v2581_v29, %s2660_s25  ;;  %v1543_v29 = vrot.slane %v1516_v2, 4  ;;  %v1504_v2 = vsel %vm184_vm0, 0.0, %v1503_v57 }
 0x1b0   : > { %v1970_v45 = vsel %vm184_vm0, 0.0, %v1969_v58  ;;  %v1971_v49 = vrot.slane %v1964_v55, 4 }
 0x1b1   : > { %2577 = vrot.lane.b32.xlu0 %v2576_v47, %s2656_s21  ;;  %v1544_v39 = vsel %vm184_vm0, %v1528_v15, %v1543_v29  ;;  %v1913_v47 = vrot.slane %v1904_v17, 4 }
 0x1b2   : > { %v1552_v40 = vperm.slane %v1544_v39, %v2753_v31  ;;  %v1972_v42 = vsel %vm184_vm0, 0.0, %v1971_v49 }
 0x1b3   : > { %v1914_v19 = vsel %vm184_vm0, 0.0, %v1913_v47 }
 0x1b4   : > { %v2621_v22 = vpack.i.bf16 %v1552_v40, %v1496_v0  ;;  %v1559_v7 = vrot.slane %v1552_v40, 4 }
 0x1b6   : > { %1986 = vrot.lane.b32.xlu2 %v1904_v17, %s2654_s19  ;;  %v1560_v32 = vsel %vm184_vm0, 0.0, %v1559_v7 }
 0x1b7   : > { %2587 = vrot.lane.b32.xlu1 %v4067_v28, %s2654_s19  ;;  %v2631_v15 = vpack.i.bf16 %v1560_v32, %v1504_v2 }
 0x1b9   : > { %2014 = vrot.lane.b32.xlu0 %v1960_v10, %s2654_s19 }
 0x1be   : > { %2592 = vrot.lane.b32.xlu2 %v2591_v13, %s2654_s19  ;;  %v1899_v13 = vrot.slane %v1872_v50, 4 }
 0x1bf   : > { %1990 = vrot.lane.b32.xlu1 %v1914_v19, %s2660_s25 }
 0x1c0   : > { %v1900_v54 = vsel %vm184_vm0, %v1884_v12, %v1899_v13 }
 0x1c1   : > { %2597 = vrot.lane.b32.xlu0 %v2596_v3, %s2658_s23  ;;  %v1908_v52 = vperm.slane %v1900_v54, %v2753_v31  ;;  %v4070_v31 = vld [vmem:[#allocation8_spill] sm:$0xff] }
 0x1c3   : > { %v1915_v3 = vrot.slane %v1908_v52, 4 }
 0x1c5   : > { %v1916_v24 = vsel %vm184_vm0, 0.0, %v1915_v3 }
 0x1c6   : > { %2018 = vrot.lane.b32.xlu2 %v1970_v45, %s2660_s25 }
 0x1c7   : > { %2607 = vrot.lane.b32.xlu1 %v2606_v20, %s2660_s25 }
 0x1c9   : > { %2602 = vrot.lane.b32.xlu0 %v4068_v30, %s2660_s25 }
 0x1ce   : > { %2612 = vrot.lane.b32.xlu2 %v2611_v21, %s2659_s24  ;;  %v4071_v21 = vld [vmem:[#allocation7_spill] sm:$0xff] }
 0x1cf   : > { %2022 = vrot.lane.b32.xlu1 %v1964_v55, %s2658_s23  ;;  %v4072_v51 = vpack.i.bf16 %v4070_v31, %v4071_v21 }
 0x1d1   : > { %1994 = vrot.lane.b32.xlu0 %v1908_v52, %s2658_s23 }
 0x1d6   : > { %2617 = vrot.lane.b32.xlu2 %v4069_v25, %s2658_s23  ;;  %v2078_v25 = vld [vmem:[%s4045_s2] sm:$0xff] }
 0x1d7   : > { %1998 = vrot.lane.b32.xlu1 %v1916_v24, %s2659_s24 }
 0x1d9   : > { %2622 = vrot.lane.b32.xlu0 %v2621_v22, %s2658_s23 }
 0x1de   : > { %2026 = vrot.lane.b32.xlu2 %v1972_v42, %s2659_s24 }
 0x1df   : > { %2632 = vrot.lane.b32.xlu1 %v2631_v15, %s2659_s24 }
 0x1e1   : > { %2627 = vrot.lane.b32.xlu0 %v4072_v51, %s2659_s24  ;;  %v2662_v51 = vmov 0  }
 0x1e2   : > { %2637 = vset.pattern.permute.xlu0 %v2662_v51  ;;  %2636 = vset.pattern.permute.xlu2 %v2662_v51 }
 0x1e6   : > { %2082 = vperm.xlu2 %2636, %v2078_v25  }
 0x1e8   : > { %v1975_v61 = vpop.permute.xlu2 %1974 }
 0x1e9   : > { %v2029_v24 = vsel %vm352_vm3, %v3677_v60, %v1975_v61 }
 0x1f0   : > { %v3884_v63 = vpop.permute.xlu2 %2547 }
 0x1f1   : > { %v2550_v5 = vunpack.i.h.bf16 %v3884_v63  ;;  %v2549_v54 = vunpack.i.l.bf16 %v3884_v63 }
 0x1f3   : > { %v1624_v60 = vsel %vm352_vm3, %v3622_v26, %v2550_v5  ;;  %v1617_v61 = vsel %vm352_vm3, %v3616_v1, %v2549_v54 }
 0x1f8   : > { %v2007_v53 = vpop.permute.xlu2 %2006 }
 0x1f9   : > { %v2538_v62 = vpop.permute.xlu1 %2537 }
 0x1fa   : > { %v2540_v9 = vunpack.i.h.bf16 %v2538_v62  ;;  %v2539_v56 = vunpack.i.l.bf16 %v2538_v62 }
 0x1fb   : > { %v2533_v46 = vpop.permute.xlu0 %2532 }
 0x1fc   : > { %v2535_v48 = vunpack.i.h.bf16 %v2533_v46  ;;  %v2534_v38 = vunpack.i.l.bf16 %v2533_v46 }
 0x1fe   : > { %v1830_v36 = vsel %vm352_vm3, %v3649_v34, %v2535_v48  ;;  %v1823_v20 = vsel %vm352_vm3, %v3646_v33, %v2534_v38  ;;  %v4073_v38 = vld [vmem:[#allocation10_spill] sm:$0xff] }
 0x1ff   : > { %v1824_v23 = vsel %vm354_vm4, %v1823_v20, %v2539_v56  ;;  %v1831_v12 = vsel %vm354_vm4, %v1830_v36, %v2540_v9  ;;  %v4074_v36 = vld [vmem:[#allocation11_spill] sm:$0xff] }
 0x200   : > { %v2568_v43 = vpop.permute.xlu2 %2567 }
 0x201   : > { %v3892_v14 = vpop.permute.xlu1 %2542  ;;  %v2570_v18 = vunpack.i.h.bf16 %v2568_v43  ;;  %v2569_v11 = vunpack.i.l.bf16 %v2568_v43 }
 0x202   : > { %v2544_v55 = vunpack.i.l.bf16 %v3892_v14  ;;  %v2545_v49 = vunpack.i.h.bf16 %v3892_v14 }
 0x203   : > { %v2003_v50 = vpop.permute.xlu0 %2002 }
 0x204   : > { %v2036_v58 = vsel %vm352_vm3, %v3673_v8, %v2003_v50  ;;  %v2079_v8 = vld [vmem:[%s4045_s2 + $0x8] sm:$0xff]  ;;  %v1406_v9 = vsel %vm352_vm3, %v4073_v38, %v2544_v55  ;;  %v1413_v20 = vsel %vm352_vm3, %v4074_v36, %v2545_v49 }
 0x205   : > { %v2037_v4 = vsel %vm354_vm4, %v2036_v58, %v2007_v53  ;;  %2087 = vperm.xlu0 %2637, %v2079_v8  }
 0x208   : > { %v3894_v35 = vpop.permute.xlu2 %2572 }
 0x209   : > { %v1979_v44 = vpop.permute.xlu1 %1978  ;;  %v2575_v43 = vunpack.i.h.bf16 %v3894_v35 }
 0x20a   : > { %v2030_v63 = vsel %vm354_vm4, %v2029_v24, %v1979_v44  ;;  %v2574_v44 = vunpack.i.l.bf16 %v3894_v35 }
 0x20b   : > { %v2553_v27 = vpop.permute.xlu0 %2552 }
 0x20c   : > { %v2555_v59 = vunpack.i.h.bf16 %v2553_v27  ;;  %v2554_v16 = vunpack.i.l.bf16 %v2553_v27 }
 0x20e   : > { %v1832_v34 = vsel %vm356_vm5, %v1831_v12, %v2555_v59  ;;  %v1825_v33 = vsel %vm356_vm5, %v1824_v23, %v2554_v16 }
 0x20f   : > { %v3899_v17 = vsel %vm358_vm6, %v1825_v33, %v2569_v11  ;;  %v3902_v6 = vsel %vm358_vm6, %v1832_v34, %v2570_v18 }
 0x210   : > { %v1987_v28 = vpop.permute.xlu2 %1986 }
 0x211   : > { %v3904_v10 = vpop.permute.xlu1 %2562 }
 0x212   : > { %v2565_v56 = vunpack.i.h.bf16 %v3904_v10  ;;  %v2564_v23 = vunpack.i.l.bf16 %v3904_v10 }
 0x213   : > { %v2558_v41 = vpop.permute.xlu0 %2557 }
 0x214   : > { %v2559_v42 = vunpack.i.l.bf16 %v2558_v41  ;;  %v2560_v53 = vunpack.i.h.bf16 %v2558_v41  ;;  %v1625_v18 = vsel %vm354_vm4, %v1624_v60, %v2565_v56  ;;  %v1618_v41 = vsel %vm354_vm4, %v1617_v61, %v2564_v23 }
 0x216   : > { %v1407_v12 = vsel %vm354_vm4, %v1406_v9, %v2559_v42  ;;  %v1414_v14 = vsel %vm354_vm4, %v1413_v20, %v2560_v53 }
 0x217   : > { %v1415_v35 = vsel %vm356_vm5, %v1414_v14, %v2575_v43 }
 0x218   : > { %v3906_v37 = vpop.permute.xlu2 %2592 }
 0x219   : > { %v2011_v29 = vpop.permute.xlu1 %2010 }
 0x21a   : > { %v2038_v13 = vsel %vm356_vm5, %v2037_v4, %v2011_v29 }
 0x21b   : > { %v1983_v39 = vpop.permute.xlu0 %1982 }
 0x21c   : > { %v2031_v48 = vsel %vm356_vm5, %v2030_v63, %v1983_v39  ;;  %v2595_v39 = vunpack.i.h.bf16 %v3906_v37 }
 0x21d   : > { %v2032_v50 = vsel %vm358_vm6, %v2031_v48, %v1987_v28  ;;  %v1408_v28 = vsel %vm356_vm5, %v1407_v12, %v2574_v44  ;;  %v4075_v44 = vld [vmem:[#allocation6_spill] sm:$0xff] }
 0x220   : > { %v2019_v40 = vpop.permute.xlu2 %2018 }
 0x221   : > { %v3908_v47 = vpop.permute.xlu1 %2582 }
 0x222   : > { %v2585_v26 = vunpack.i.h.bf16 %v3908_v47  ;;  %v2584_v1 = vunpack.i.l.bf16 %v3908_v47  ;;  %v2594_v47 = vunpack.i.l.bf16 %v3906_v37 }
 0x223   : > { %v3910_v0 = vpop.permute.xlu0 %2577 }
 0x224   : > { %v2580_v27 = vunpack.i.h.bf16 %v3910_v0  ;;  %v2579_v59 = vunpack.i.l.bf16 %v3910_v0  ;;  %v1834_v0 = vsel %vm360_vm7, %v3902_v6, %v2585_v26 }
 0x228   : > { %v3914_v7 = vpop.permute.xlu2 %2612 }
 0x229   : > { %v3912_v22 = vpop.permute.xlu1 %2587  ;;  %v2614_v5 = vunpack.i.l.bf16 %v3914_v7 }
 0x22a   : > { %v2590_v58 = vunpack.i.h.bf16 %v3912_v22  ;;  %v2589_v4 = vunpack.i.l.bf16 %v3912_v22 }
 0x22b   : > { %v2015_v57 = vpop.permute.xlu0 %2014 }
 0x22c   : > { %v2039_v30 = vsel %vm358_vm6, %v2038_v13, %v2015_v57  ;;  %v1409_v25 = vsel %vm358_vm6, %v1408_v28, %v2589_v4  ;;  %v1416_v24 = vsel %vm358_vm6, %v1415_v35, %v2590_v58 }
 0x22d   : > { %v2040_v52 = vsel %vm360_vm7, %v2039_v30, %v2019_v40  ;;  %v1827_v40 = vsel %vm360_vm7, %v3899_v17, %v2584_v1  ;;  %v2615_v30 = vunpack.i.h.bf16 %v3914_v7 }
 0x230   : > { %v3918_v32 = vpop.permute.xlu2 %2617 }
 0x231   : > { %v1991_v19 = vpop.permute.xlu1 %1990  ;;  %v2620_v7 = vunpack.i.h.bf16 %v3918_v32  ;;  %v2619_v42 = vunpack.i.l.bf16 %v3918_v32 }
 0x232   : > { %v2033_v16 = vsel %vm360_vm7, %v2032_v50, %v1991_v19  ;;  %v1619_v19 = vsel %vm356_vm5, %v1618_v41, %v2579_v59  ;;  %v4076_v59 = vld [vmem:[#allocation9_spill] sm:$0xff]  ;;  %v4080_v41 = vld [vmem:[#allocation3_spill] sm:$0xff] }
 0x233   : > { %v3916_v2 = vpop.permute.xlu0 %2597 }
 0x234   : > { %v2600_v11 = vunpack.i.h.bf16 %v3916_v2  ;;  %v2599_v34 = vunpack.i.l.bf16 %v3916_v2  ;;  %v1626_v2 = vsel %vm356_vm5, %v1625_v18, %v2580_v27  ;;  %v4077_v18 = vld [vmem:[#allocation4_spill] sm:$0xff] }
 0x235   : > { %v1627_v22 = vsel %vm358_vm6, %v1626_v2, %v2595_v39 }
 0x236   : > { %v1828_v37 = vsel %vm362_vm8, %v1827_v40, %v2599_v34  ;;  %v1835_v6 = vsel %vm362_vm8, %v1834_v0, %v2600_v11  ;;  %v4078_v11 = vld [vmem:[#allocation5_spill] sm:$0xff]  ;;  %v2077_v34 = vld [vmem:[%s4044_s1 + $0x8] sm:$0xff] }
 0x237   : > { %v1836_v49 = vsel %vm364_vm9, %v1835_v6, %v2615_v30 }
 0x238   : > { %v2027_v31 = vpop.permute.xlu2 %2026  ;;  %v2064_v38 = vrot.slane %v1836_v49, 4 }
 0x239   : > { %v3922_v15 = vpop.permute.xlu1 %2607 }
 0x23a   : > { %v2610_v13 = vunpack.i.h.bf16 %v3922_v15  ;;  %v2609_v17 = vunpack.i.l.bf16 %v3922_v15  ;;  %v1829_v15 = vsel %vm364_vm9, %v1828_v37, %v2614_v5 }
 0x23b   : > { %v3924_v45 = vpop.permute.xlu0 %2602  ;;  %v2063_v60 = vrot.slane %v1829_v15, 4 }
 0x23c   : > { %v2605_v54 = vunpack.i.h.bf16 %v3924_v45  ;;  %v2604_v55 = vunpack.i.l.bf16 %v3924_v45 }
 0x23e   : > { %v1410_v51 = vsel %vm360_vm7, %v1409_v25, %v2604_v55  ;;  %v1417_v63 = vsel %vm360_vm7, %v1416_v24, %v2605_v54 }
 0x23f   : > { %v1411_v23 = vsel %vm362_vm8, %v1410_v51, %v2619_v42  ;;  %v1418_v12 = vsel %vm362_vm8, %v1417_v63, %v2620_v7 }
 0x240   : > { %v2083_v28 = vpop.permute.xlu2 %2082 }
 0x241   : > { %v2023_v3 = vpop.permute.xlu1 %2022 }
 0x242   : > { %v2041_v21 = vsel %vm362_vm8, %v2040_v52, %v2023_v3  ;;  %v1620_v52 = vsel %vm358_vm6, %v1619_v19, %v2594_v47 }
 0x243   : > { %v1995_v62 = vpop.permute.xlu0 %1994  ;;  %v2042_v46 = vsel %vm364_vm9, %v2041_v21, %v2027_v31  ;;  %v1621_v45 = vsel %vm360_vm7, %v1620_v52, %v2609_v17  ;;  %v1628_v31 = vsel %vm360_vm7, %v1627_v22, %v2610_v13 }
 0x244   : > { %2219 = vmatpush.msk.msra.mxu1 %vm2067_vm10, %v2042_v46  ;;  %2230 = vmatpush.msk.msra.mxu3 %vm2067_vm10, %v2042_v46  ;;  %v2034_v33 = vsel %vm362_vm8, %v2033_v16, %v1995_v62 }
 0x249   : > { %v1999_v10 = vpop.permute.xlu1 %1998 }
 0x24a   : > { %v2035_v29 = vsel %vm364_vm9, %v2034_v33, %v1999_v10  ;;  %v4079_v33 = vld [vmem:[#allocation2_spill] sm:$0xff] }
 0x24b   : > { %v2623_v57 = vpop.permute.xlu0 %2622  ;;  %2216 = vmatpush.msk.msra.mxu0 %vm2067_vm10, %v2035_v29  ;;  %2225 = vmatpush.msk.msra.mxu2 %vm2067_vm10, %v2035_v29  ;;  %v2076_v10 = vld [vmem:[%s4044_s1] sm:$0xff] }
 0x24c   : > { %v2625_v3 = vunpack.i.h.bf16 %v2623_v57  ;;  %v2624_v8 = vunpack.i.l.bf16 %v2623_v57 }
 0x24e   : > { %v1622_v48 = vsel %vm362_vm8, %v1621_v45, %v2624_v8  ;;  %v1629_v61 = vsel %vm362_vm8, %v1628_v31, %v2625_v3 }
 0x251   : > { %v2633_v21 = vpop.permute.xlu1 %2632 }
 0x252   : > { %v2635_v53 = vunpack.i.h.bf16 %v2633_v21  ;;  %v2634_v62 = vunpack.i.l.bf16 %v2633_v21 }
 0x253   : > { %v2628_v46 = vpop.permute.xlu0 %2627 }
 0x254   : > { %v2630_v9 = vunpack.i.h.bf16 %v2628_v46  ;;  %v2629_v32 = vunpack.i.l.bf16 %v2628_v46  ;;  %v1623_v56 = vsel %vm364_vm9, %v1622_v48, %v2634_v62  ;;  %v1630_v36 = vsel %vm364_vm9, %v1629_v61, %v2635_v53 }
 0x255   : > { %v2074_v20 = vsel %vm2067_vm10, %v1623_v56, %v2063_v60  ;;  %v2075_v43 = vsel %vm2067_vm10, %v1630_v36, %v2064_v38 }
 0x256   : > { %2115 = vmatpush.msra.mxu0 %v2074_v20  ;;  %2226 = vmatpush.msra.mxu2 %v2074_v20  ;;  %v1412_v14 = vsel %vm364_vm9, %v1411_v23, %v2629_v32  ;;  %v1419_v26 = vsel %vm364_vm9, %v1418_v12, %v2630_v9 }
 0x257   : > { %2138 = vmatpush.msra.mxu1 %v2075_v43  ;;  %2231 = vmatpush.msra.mxu3 %v2075_v43  ;;  %v2057_v1 = vrot.slane %v1412_v14, 4  ;;  %v2058_v50 = vrot.slane %v1419_v26, 4 }
 0x259   : > { %v2072_v27 = vsel %vm2067_vm10, %v4075_v44, %v2057_v1  ;;  %v2073_v16 = vsel %vm2067_vm10, %v4076_v59, %v2058_v50 }
 0x25a   : > { %2116 = vmatpush.msra.mxu0 %v2072_v27  ;;  %2227 = vmatpush.msra.mxu2 %v2072_v27 }
 0x25b   : > { %2139 = vmatpush.msra.mxu1 %v2073_v16  ;;  %2232 = vmatpush.msra.mxu3 %v2073_v16 }
 0x25c   : > { %2117 = vmatpush.msra.mxu0 %v4077_v18  ;;  %2228 = vmatpush.msra.mxu2 %v4077_v18 }
 0x25d   : > { %2140 = vmatpush.msra.mxu1 %v4078_v11  ;;  %2233 = vmatpush.msra.mxu3 %v4078_v11 }
 0x25e   : > { %2118 = vmatpush.msra.mxu0 %v4079_v33  ;;  %2229 = vmatpush.msra.mxu2 %v4079_v33 }
 0x25f   : > { %2141 = vmatpush.msra.mxu1 %v4080_v41  ;;  %2234 = vmatpush.msra.mxu3 %v4080_v41 }
 0x260   : > { %2218 = vmatmul.msk.f32.vlgmr.msra.gmra.mxu2 %vm2090_vm11, %v2077_v34  ;;  %2221 = vmatmul.msk.f32.vlgmr.msra.gmra.mxu3 %vm2090_vm11, %v2077_v34 }
 0x261   : > { %2217 = vmatmul.msk.f32.vlgmr.msra.gmra.mxu0 %vm2090_vm11, %v2076_v10  ;;  %2220 = vmatmul.msk.f32.vlgmr.msra.gmra.mxu1 %vm2090_vm11, %v2076_v10 }
 0x277   : > { %v2088_v0 = vpop.permute.xlu0 %2087 }
 0x2de   : > { %v2120_v35 = vpop.f32.mrf.mxu0  ;;  %v2143_v29 = vpop.f32.mrf.mxu1 }
 0x2df   : > { %v2121_v39 = vadd.f32 %v2120_v35, %v2083_v28  ;;  %v2144_v47 = vadd.f32 %v2143_v29, %v2083_v28 }
 0x2e1   : > { %2149 = vst [vmem:[%s170_s11] sm:$0xff] %v2121_v39 }
 0x2e2   : > { %2150 = vst [vmem:[%s170_s11 + $0x8] sm:$0xff] %v2144_v47 }
 0x2e3   : > { %v2123_v40 = vpop.f32.mrf.mxu2  ;;  %v2146_v57 = vpop.f32.mrf.mxu3 }
 0x2e4   : > { %v2124_v19 = vadd.f32 %v2123_v40, %v2088_v0  ;;  %v2147_v2 = vadd.f32 %v2146_v57, %v2088_v0 }
 0x2e6   : > { %2151 = vst [vmem:[%s170_s11 + $0x10] sm:$0xff] %v2124_v19 }
 0x2e7   : > { %2152 = vst [vmem:[%s170_s11 + $0x18] sm:$0xff] %v2147_v2 }
 0x2e8 PF: > { %s13_s12 = sadd.s32 1, %s2649_s12  }
 0x2e9   : > { %p10_p4 = scmp.ge.s32.totalorder %s13_s12, 4  }
 0x2eb   :  { %12 = sbr.rel (!%p10_p4) target bundleno = 1 (0x1), region = 62 }

</bundles_post_ra>
